<compile_context>
chip_gen: v5e
topology: v5e:2x2
jax: 0.10.0
libtpu: 0.0.40
codegen_flags: <defaults>
</compile_context>

<pallas_src>
import functools

import jax
import jax.numpy as jnp
from jax import lax
from jax.experimental import pallas as pl
from jax.experimental.pallas import tpu as pltpu


def _sepconv_kernel(x_ref, wdw1_ref, wpw1_ref, g1_ref, b1_ref,
                    wdw2_ref, wpw2_ref, g2_ref, b2_ref,
                    o_ref, xg_ref,
                    *, n, c_in, c_out, k, w, pad, hw, eps):
    # x_ref:   (N*C_in, H*W)    batch packed on sublanes, lane-dense spatial
    # wdw*_ref:(N*C_in, k*k)    depthwise weights, tiled over the batch rows
    # wpw1_ref:(C_in,  C_in)    pointwise weights, block 1
    # wpw2_ref:(C_out, C_in)    pointwise weights, block 2
    # g*/b*:   (C, 1)           BN affine parameters
    # o_ref:   (N*C_out, H*W)   normalized output (lane-dense store)
    # xg_ref:  (N*C_in, Lg)     guarded, zero-padded flat buffer (scratch),
    #                           shared by both depthwise convs.
    ofs = pad * (w + 1)                 # start of the real image in the guard

    # ---- W-boundary wrap masks for the flat-shift trick (built in-kernel) ----
    col = lax.broadcasted_iota(jnp.int32, (1, hw), 1) % w
    masks = []
    for j in range(k):
        lo = max(0, pad - j)
        hi = min(w, w + pad - j)
        if lo == 0 and hi == w:          # center column never wraps
            masks.append(None)
        else:
            m = jnp.logical_and(col >= lo, col < hi).astype(jnp.float32)
            masks.append(m)              # (1, H*W)

    # ---- zero the guard buffer once; its border doubles as conv padding -----
    xg_ref[...] = jnp.zeros_like(xg_ref)

    def dw_conv(wdw):
        """Depthwise KxK conv on the current guard-buffer contents."""
        xg = xg_ref[...]                                  # (N*C_in, Lg), load once
        cols = []
        for j in range(k):                                # k independent VALU chains
            t = None
            for i in range(k):
                st = i * w + j
                idx = i * k + j
                term = xg[:, st:st + hw] * wdw[:, idx:idx + 1]
                t = term if t is None else t + term
            cols.append(t if masks[j] is None else t * masks[j])
        acc = cols[0]
        for t in cols[1:]:
            acc = acc + t
        return acc                                        # (N*C_in, H*W)

    def pointwise(acc, wpw):
        """1x1 conv per image; returns a list of n arrays of shape (C_o, H*W)."""
        outs = []
        for b in range(n):
            a = acc[b * c_in:(b + 1) * c_in, :]           # (C_in, H*W)
            if c_in >= 16:
                # real widths: feed the (otherwise idle) MXU instead of the VALU
                y = jnp.dot(wpw, a, preferred_element_type=jnp.float32)
            else:
                y = wpw[:, 0:1] * a[0:1, :]
                for ci in range(1, c_in):
                    y = y + wpw[:, ci:ci + 1] * a[ci:ci + 1, :]
            outs.append(y)
        return outs

    def bn_scale_shift(ys, gamma, beta):
        """Training-mode BN (biased variance) -> per-channel scale/shift."""
        s = jnp.sum(ys[0], axis=-1, keepdims=True)
        q = jnp.sum(ys[0] * ys[0], axis=-1, keepdims=True)
        for b in range(1, n):
            s = s + jnp.sum(ys[b], axis=-1, keepdims=True)
            q = q + jnp.sum(ys[b] * ys[b], axis=-1, keepdims=True)
        inv = 1.0 / float(n * hw)
        mean = s * inv
        var = jnp.maximum(q * inv - mean * mean, 0.0)     # cancellation guard
        scale = gamma.astype(jnp.float32) * lax.rsqrt(var + eps)
        shift = beta.astype(jnp.float32) - mean * scale
        return scale, shift                               # each (C, 1)

    # ---- block 1: ReLU -> depthwise -> pointwise (C_in -> C_in) -> BN stats --
    xg_ref[:, ofs:ofs + hw] = jnp.maximum(x_ref[...].astype(jnp.float32), 0.0)
    acc1 = dw_conv(wdw1_ref[...].astype(jnp.float32))
    y1 = pointwise(acc1, wpw1_ref[...].astype(jnp.float32))
    s1, t1 = bn_scale_shift(y1, g1_ref[...], b1_ref[...])

    # ---- block 2: BN1-apply fused with ReLU while refilling the guard -------
    for b in range(n):
        xg_ref[b * c_in:(b + 1) * c_in, ofs:ofs + hw] = jnp.maximum(
            y1[b] * s1 + t1, 0.0)
    acc2 = dw_conv(wdw2_ref[...].astype(jnp.float32))
    y2 = pointwise(acc2, wpw2_ref[...].astype(jnp.float32))
    s2, t2 = bn_scale_shift(y2, g2_ref[...], b2_ref[...])

    # ---- fused BN2 apply + lane-dense store ----------------------------------
    for b in range(n):
        o_ref[b * c_out:(b + 1) * c_out, :] = (y2[b] * s2 + t2).astype(o_ref.dtype)


@functools.partial(jax.jit, static_argnames=("stride", "padding", "eps"))
def sep_conv(x_nchw, params, *, stride, padding, eps=1e-5):
    """SepConv forward. x_nchw: (N, C_in, H, W) -> (N, C_out, H, W)."""
    dw1, pw1, g1, b1, dw2, pw2, g2, b2 = params
    n, c_in, h, w = x_nchw.shape
    kh, kw = int(dw1.shape[2]), int(dw1.shape[3])
    c_mid = int(pw1.shape[0])
    c_out = int(pw2.shape[0])
    if stride != 1 or kh != kw or kw != 2 * padding + 1 or c_mid != c_in:
        # TODO(synk): add a strided / non-'same'-padding path; the flat-shift
        # fast path assumes stride=1 and kernel_size == 2*padding + 1.
        raise NotImplementedError(
            "fused SepConv kernel requires stride=1, k == 2*pad+1, C_mid == C_in")
    k = kh
    hw = h * w
    lg = (h + 2 * padding) * w + 2 * padding          # guarded flat row length

    # Free metadata reshapes into the sublane-packed (N*C, H*W) layout.
    x_flat = x_nchw.reshape(n * c_in, hw).astype(jnp.float32)
    wdw1_p = jnp.tile(dw1[:, 0, :, :].reshape(c_in, k * k), (n, 1)).astype(jnp.float32)
    wdw2_p = jnp.tile(dw2[:, 0, :, :].reshape(c_in, k * k), (n, 1)).astype(jnp.float32)
    wpw1_m = pw1[:, :, 0, 0].astype(jnp.float32)       # (C_in, C_in)
    wpw2_m = pw2[:, :, 0, 0].astype(jnp.float32)       # (C_out, C_in)
    g1_2 = g1.reshape(c_in, 1).astype(jnp.float32)
    b1_2 = b1.reshape(c_in, 1).astype(jnp.float32)
    g2_2 = g2.reshape(c_out, 1).astype(jnp.float32)
    b2_2 = b2.reshape(c_out, 1).astype(jnp.float32)

    kern = functools.partial(_sepconv_kernel, n=n, c_in=c_in, c_out=c_out,
                             k=k, w=w, pad=padding, hw=hw, eps=eps)
    out = pl.pallas_call(
        kern,
        out_shape=jax.ShapeDtypeStruct((n * c_out, hw), jnp.float32),
        grid=(1,),                                     # single fused invocation
        in_specs=[
            pl.BlockSpec((n * c_in, hw), lambda i: (0, 0)),
            pl.BlockSpec((n * c_in, k * k), lambda i: (0, 0)),
            pl.BlockSpec((c_in, c_in), lambda i: (0, 0)),
            pl.BlockSpec((c_in, 1), lambda i: (0, 0)),
            pl.BlockSpec((c_in, 1), lambda i: (0, 0)),
            pl.BlockSpec((n * c_in, k * k), lambda i: (0, 0)),
            pl.BlockSpec((c_out, c_in), lambda i: (0, 0)),
            pl.BlockSpec((c_out, 1), lambda i: (0, 0)),
            pl.BlockSpec((c_out, 1), lambda i: (0, 0)),
        ],
        out_specs=pl.BlockSpec((n * c_out, hw), lambda i: (0, 0)),
        scratch_shapes=[pltpu.VMEM((n * c_in, lg), jnp.float32)],
        compiler_params=pltpu.CompilerParams(
            dimension_semantics=("arbitrary",)),
    )(x_flat, wdw1_p, wpw1_m, g1_2, b1_2, wdw2_p, wpw2_m, g2_2, b2_2)
    return out.reshape(n, c_out, h, w)                 # free metadata reshape


# ----------------------------- pure-JAX reference -----------------------------
def _ref_block(x, w_dw, w_pw, gamma, beta, *, padding, eps=1e-5):
    n, c, h, w = x.shape
    k = w_dw.shape[2]
    t = jnp.maximum(x, 0.0)
    t = jnp.pad(t, ((0, 0), (0, 0), (padding, padding), (padding, padding)))
    h_out = h + 2 * padding - k + 1
    w_out = w + 2 * padding - k + 1
    dw = jnp.zeros((n, c, h_out, w_out), jnp.float32)
    for i in range(k):
        for j in range(k):
            dw = dw + (t[:, :, i:i + h_out, j:j + w_out]
                       * w_dw[:, 0, i, j][None, :, None, None])
    pw = jnp.einsum("oc,nchw->nohw", w_pw[:, :, 0, 0], dw,
                    precision=lax.Precision.HIGHEST)
    mean = jnp.mean(pw, axis=(0, 2, 3), keepdims=True)
    var = jnp.mean(jnp.square(pw - mean), axis=(0, 2, 3), keepdims=True)
    y = (pw - mean) * lax.rsqrt(var + eps)
    return y * gamma[None, :, None, None] + beta[None, :, None, None]


def _ref_sepconv(x, params, *, padding, eps=1e-5):
    dw1, pw1, g1, b1, dw2, pw2, g2, b2 = params
    y = _ref_block(x, dw1, pw1, g1, b1, padding=padding, eps=eps)
    return _ref_block(y, dw2, pw2, g2, b2, padding=padding, eps=eps)


if __name__ == "__main__":
    # SepConv(C_in=4, C_out=8, kernel_size=3, stride=1, padding=1)
    C_in, C_out = 4, 8
    K = 3
    stride, padding = 1, 1

    key = jax.random.PRNGKey(0)
    ks = jax.random.split(key, 9)
    dw1 = jax.random.normal(ks[0], (C_in, 1, K, K), jnp.float32) * 0.2
    pw1 = jax.random.normal(ks[1], (C_in, C_in, 1, 1), jnp.float32) * 0.2
    g1 = 1.0 + 0.1 * jax.random.normal(ks[2], (C_in,), jnp.float32)
    b1 = 0.1 * jax.random.normal(ks[3], (C_in,), jnp.float32)
    dw2 = jax.random.normal(ks[4], (C_in, 1, K, K), jnp.float32) * 0.2
    pw2 = jax.random.normal(ks[5], (C_out, C_in, 1, 1), jnp.float32) * 0.2
    g2 = 1.0 + 0.1 * jax.random.normal(ks[6], (C_out,), jnp.float32)
    b2 = 0.1 * jax.random.normal(ks[7], (C_out,), jnp.float32)
    x = jax.random.normal(ks[8], (2, C_in, 16, 16), jnp.float32)     # NCHW

    params = (dw1, pw1, g1, b1, dw2, pw2, g2, b2)
    out = sep_conv(x, params, stride=stride, padding=padding)
    out = jax.block_until_ready(out)
    assert out.shape == (2, C_out, 16, 16), out.shape

    # correctness check against a pure-JAX float32 reference
    ref = _ref_sepconv(x, params, padding=padding)
    err = float(jnp.max(jnp.abs(out - ref)))
    assert err < 2e-3, f"max abs error {err}"
    print("KERNEL_OK")
</pallas_src>

<mosaic_0001>
module attributes {stable_mosaic.version = 11 : i64} {
  func.func @_sepconv_kernel(%arg0: i32, %arg1: memref<8x256xf32, #tpu.memory_space<vmem>>, %arg2: memref<8x9xf32, #tpu.memory_space<vmem>>, %arg3: memref<4x4xf32, #tpu.memory_space<vmem>>, %arg4: memref<4x1xf32, #tpu.memory_space<vmem>>, %arg5: memref<4x1xf32, #tpu.memory_space<vmem>>, %arg6: memref<8x9xf32, #tpu.memory_space<vmem>>, %arg7: memref<8x4xf32, #tpu.memory_space<vmem>>, %arg8: memref<8x1xf32, #tpu.memory_space<vmem>>, %arg9: memref<8x1xf32, #tpu.memory_space<vmem>>, %arg10: memref<16x256xf32, #tpu.memory_space<vmem>>, %arg11: memref<8x290xf32, #tpu.memory_space<vmem>>) attributes {dimension_semantics = [#tpu.dimension_semantics<arbitrary>], iteration_bounds = array<i64: 1>, scalar_prefetch = 0 : i64, scratch_operands = 1 : i64, tpu.core_type = #tpu.core_type<tc>, window_params = [{pipeline_mode = #tpu.pipeline_mode<synchronous>, transform_indices = @transform_0, window_bounds = array<i64: 8, 256>}, {pipeline_mode = #tpu.pipeline_mode<synchronous>, transform_indices = @transform_1, window_bounds = array<i64: 8, 9>}, {pipeline_mode = #tpu.pipeline_mode<synchronous>, transform_indices = @transform_2, window_bounds = array<i64: 4, 4>}, {pipeline_mode = #tpu.pipeline_mode<synchronous>, transform_indices = @transform_3, window_bounds = array<i64: 4, 1>}, {pipeline_mode = #tpu.pipeline_mode<synchronous>, transform_indices = @transform_4, window_bounds = array<i64: 4, 1>}, {pipeline_mode = #tpu.pipeline_mode<synchronous>, transform_indices = @transform_5, window_bounds = array<i64: 8, 9>}, {pipeline_mode = #tpu.pipeline_mode<synchronous>, transform_indices = @transform_6, window_bounds = array<i64: 8, 4>}, {pipeline_mode = #tpu.pipeline_mode<synchronous>, transform_indices = @transform_7, window_bounds = array<i64: 8, 1>}, {pipeline_mode = #tpu.pipeline_mode<synchronous>, transform_indices = @transform_8, window_bounds = array<i64: 8, 1>}, {pipeline_mode = #tpu.pipeline_mode<synchronous>, transform_indices = @transform_9, window_bounds = array<i64: 16, 256>}]} {
    %0 = tpu.iota {dimensions = array<i32: 1>} : vector<1x256xi32>
    %c16_i32 = arith.constant 16 : i32
    %c0_i32 = arith.constant 0 : i32
    %1 = arith.cmpi eq, %c16_i32, %c0_i32 : i32
    %c1_i32 = arith.constant 1 : i32
    %2 = arith.select %1, %c1_i32, %c16_i32 : i32
    %3 = vector.broadcast %2 : i32 to vector<1x256xi32>
    %4 = arith.remsi %0, %3 : vector<1x256xi32>
    %c0_i32_0 = arith.constant 0 : i32
    %5 = vector.broadcast %c0_i32_0 : i32 to vector<1x256xi32>
    %6 = arith.cmpi ne, %4, %5 : vector<1x256xi32>
    %c0_i32_1 = arith.constant 0 : i32
    %7 = vector.broadcast %c0_i32_1 : i32 to vector<1x256xi32>
    %8 = arith.cmpi slt, %4, %7 : vector<1x256xi32>
    %c0_i32_2 = arith.constant 0 : i32
    %9 = arith.cmpi slt, %2, %c0_i32_2 : i32
    %10 = vector.broadcast %9 : i1 to vector<1x256xi1>
    %11 = vector.broadcast %10 : vector<1x256xi1> to vector<1x256xi1>
    %12 = arith.xori %8, %11 : vector<1x256xi1>
    %13 = arith.andi %12, %6 : vector<1x256xi1>
    %14 = vector.broadcast %2 : i32 to vector<1x256xi32>
    %15 = arith.addi %4, %14 : vector<1x256xi32>
    %16 = arith.select %13, %15, %4 : vector<1x256xi1>, vector<1x256xi32>
    %c1_i32_3 = arith.constant 1 : i32
    %17 = vector.broadcast %c1_i32_3 : i32 to vector<1x256xi32>
    %18 = arith.cmpi sge, %16, %17 : vector<1x256xi32>
    %c16_i32_4 = arith.constant 16 : i32
    %19 = vector.broadcast %c16_i32_4 : i32 to vector<1x256xi32>
    %20 = arith.cmpi slt, %16, %19 : vector<1x256xi32>
    %21 = arith.andi %18, %20 : vector<1x256xi1>
    %22 = arith.extui %21 : vector<1x256xi1> to vector<1x256xi32>
    %23 = arith.sitofp %22 : vector<1x256xi32> to vector<1x256xf32>
    %c0_i32_5 = arith.constant 0 : i32
    %24 = vector.broadcast %c0_i32_5 : i32 to vector<1x256xi32>
    %25 = arith.cmpi sge, %16, %24 : vector<1x256xi32>
    %c15_i32 = arith.constant 15 : i32
    %26 = vector.broadcast %c15_i32 : i32 to vector<1x256xi32>
    %27 = arith.cmpi slt, %16, %26 : vector<1x256xi32>
    %28 = arith.andi %25, %27 : vector<1x256xi1>
    %29 = arith.extui %28 : vector<1x256xi1> to vector<1x256xi32>
    %30 = arith.sitofp %29 : vector<1x256xi32> to vector<1x256xf32>
    %cst = arith.constant 0.000000e+00 : f32
    %31 = vector.broadcast %cst : f32 to vector<8x290xf32>
    %c0 = arith.constant 0 : index
    %c0_6 = arith.constant 0 : index
    %32 = vector.load %arg11[%c0, %c0_6] : memref<8x290xf32, #tpu.memory_space<vmem>>, vector<8x290xf32>
    tpu.vector_store %arg11[%c0, %c0_6], %31 {strides = array<i32>} : memref<8x290xf32, #tpu.memory_space<vmem>>, vector<8x290xf32>,
    %c0_7 = arith.constant 0 : index
    %c0_8 = arith.constant 0 : index
    %33 = vector.load %arg1[%c0_7, %c0_8] : memref<8x256xf32, #tpu.memory_space<vmem>>, vector<8x256xf32>
    %cst_9 = arith.constant 0.000000e+00 : f32
    %34 = vector.broadcast %cst_9 : f32 to vector<8x256xf32>
    %35 = arith.maximumf %33, %34 : vector<8x256xf32>
    %c0_10 = arith.constant 0 : index
    %c17 = arith.constant 17 : index
    %36 = vector.load %arg11[%c0_10, %c17] : memref<8x290xf32, #tpu.memory_space<vmem>>, vector<8x256xf32>
    tpu.vector_store %arg11[%c0_10, %c17], %35 {strides = array<i32>} : memref<8x290xf32, #tpu.memory_space<vmem>>, vector<8x256xf32>,
    %c0_11 = arith.constant 0 : index
    %c0_12 = arith.constant 0 : index
    %37 = vector.load %arg2[%c0_11, %c0_12] : memref<8x9xf32, #tpu.memory_space<vmem>>, vector<8x9xf32>
    %c0_13 = arith.constant 0 : index
    %c0_14 = arith.constant 0 : index
    %38 = vector.load %arg11[%c0_13, %c0_14] : memref<8x290xf32, #tpu.memory_space<vmem>>, vector<8x290xf32>
    %39 = vector.extract_strided_slice %38 {offsets = [0, 0], sizes = [8, 256], strides = [1, 1]} : vector<8x290xf32> to vector<8x256xf32>
    %40 = vector.extract_strided_slice %37 {offsets = [0, 0], sizes = [8, 1], strides = [1, 1]} : vector<8x9xf32> to vector<8x1xf32>
    %41 = vector.broadcast %40 : vector<8x1xf32> to vector<8x256xf32>
    %42 = arith.mulf %39, %41 : vector<8x256xf32>
    %43 = vector.extract_strided_slice %38 {offsets = [0, 16], sizes = [8, 256], strides = [1, 1]} : vector<8x290xf32> to vector<8x256xf32>
    %44 = vector.extract_strided_slice %37 {offsets = [0, 3], sizes = [8, 1], strides = [1, 1]} : vector<8x9xf32> to vector<8x1xf32>
    %45 = vector.broadcast %44 : vector<8x1xf32> to vector<8x256xf32>
    %46 = arith.mulf %43, %45 : vector<8x256xf32>
    %47 = arith.addf %42, %46 : vector<8x256xf32>
    %48 = vector.extract_strided_slice %38 {offsets = [0, 32], sizes = [8, 256], strides = [1, 1]} : vector<8x290xf32> to vector<8x256xf32>
    %49 = vector.extract_strided_slice %37 {offsets = [0, 6], sizes = [8, 1], strides = [1, 1]} : vector<8x9xf32> to vector<8x1xf32>
    %50 = vector.broadcast %49 : vector<8x1xf32> to vector<8x256xf32>
    %51 = arith.mulf %48, %50 : vector<8x256xf32>
    %52 = arith.addf %47, %51 : vector<8x256xf32>
    %53 = vector.broadcast %23 : vector<1x256xf32> to vector<8x256xf32>
    %54 = arith.mulf %52, %53 : vector<8x256xf32>
    %55 = vector.extract_strided_slice %38 {offsets = [0, 1], sizes = [8, 256], strides = [1, 1]} : vector<8x290xf32> to vector<8x256xf32>
    %56 = vector.extract_strided_slice %37 {offsets = [0, 1], sizes = [8, 1], strides = [1, 1]} : vector<8x9xf32> to vector<8x1xf32>
    %57 = vector.broadcast %56 : vector<8x1xf32> to vector<8x256xf32>
    %58 = arith.mulf %55, %57 : vector<8x256xf32>
    %59 = vector.extract_strided_slice %38 {offsets = [0, 17], sizes = [8, 256], strides = [1, 1]} : vector<8x290xf32> to vector<8x256xf32>
    %60 = vector.extract_strided_slice %37 {offsets = [0, 4], sizes = [8, 1], strides = [1, 1]} : vector<8x9xf32> to vector<8x1xf32>
    %61 = vector.broadcast %60 : vector<8x1xf32> to vector<8x256xf32>
    %62 = arith.mulf %59, %61 : vector<8x256xf32>
    %63 = arith.addf %58, %62 : vector<8x256xf32>
    %64 = vector.extract_strided_slice %38 {offsets = [0, 33], sizes = [8, 256], strides = [1, 1]} : vector<8x290xf32> to vector<8x256xf32>
    %65 = vector.extract_strided_slice %37 {offsets = [0, 7], sizes = [8, 1], strides = [1, 1]} : vector<8x9xf32> to vector<8x1xf32>
    %66 = vector.broadcast %65 : vector<8x1xf32> to vector<8x256xf32>
    %67 = arith.mulf %64, %66 : vector<8x256xf32>
    %68 = arith.addf %63, %67 : vector<8x256xf32>
    %69 = vector.extract_strided_slice %38 {offsets = [0, 2], sizes = [8, 256], strides = [1, 1]} : vector<8x290xf32> to vector<8x256xf32>
    %70 = vector.extract_strided_slice %37 {offsets = [0, 2], sizes = [8, 1], strides = [1, 1]} : vector<8x9xf32> to vector<8x1xf32>
    %71 = vector.broadcast %70 : vector<8x1xf32> to vector<8x256xf32>
    %72 = arith.mulf %69, %71 : vector<8x256xf32>
    %73 = vector.extract_strided_slice %38 {offsets = [0, 18], sizes = [8, 256], strides = [1, 1]} : vector<8x290xf32> to vector<8x256xf32>
    %74 = vector.extract_strided_slice %37 {offsets = [0, 5], sizes = [8, 1], strides = [1, 1]} : vector<8x9xf32> to vector<8x1xf32>
    %75 = vector.broadcast %74 : vector<8x1xf32> to vector<8x256xf32>
    %76 = arith.mulf %73, %75 : vector<8x256xf32>
    %77 = arith.addf %72, %76 : vector<8x256xf32>
    %78 = vector.extract_strided_slice %38 {offsets = [0, 34], sizes = [8, 256], strides = [1, 1]} : vector<8x290xf32> to vector<8x256xf32>
    %79 = vector.extract_strided_slice %37 {offsets = [0, 8], sizes = [8, 1], strides = [1, 1]} : vector<8x9xf32> to vector<8x1xf32>
    %80 = vector.broadcast %79 : vector<8x1xf32> to vector<8x256xf32>
    %81 = arith.mulf %78, %80 : vector<8x256xf32>
    %82 = arith.addf %77, %81 : vector<8x256xf32>
    %83 = vector.broadcast %30 : vector<1x256xf32> to vector<8x256xf32>
    %84 = arith.mulf %82, %83 : vector<8x256xf32>
    %85 = arith.addf %54, %68 : vector<8x256xf32>
    %86 = arith.addf %85, %84 : vector<8x256xf32>
    %c0_15 = arith.constant 0 : index
    %c0_16 = arith.constant 0 : index
    %87 = vector.load %arg3[%c0_15, %c0_16] : memref<4x4xf32, #tpu.memory_space<vmem>>, vector<4x4xf32>
    %88 = vector.extract_strided_slice %86 {offsets = [0, 0], sizes = [4, 256], strides = [1, 1]} : vector<8x256xf32> to vector<4x256xf32>
    %89 = vector.extract_strided_slice %87 {offsets = [0, 0], sizes = [4, 1], strides = [1, 1]} : vector<4x4xf32> to vector<4x1xf32>
    %90 = vector.extract_strided_slice %88 {offsets = [0, 0], sizes = [1, 256], strides = [1, 1]} : vector<4x256xf32> to vector<1x256xf32>
    %91 = vector.broadcast %89 : vector<4x1xf32> to vector<4x256xf32>
    %92 = vector.broadcast %90 : vector<1x256xf32> to vector<4x256xf32>
    %93 = arith.mulf %91, %92 : vector<4x256xf32>
    %94 = vector.extract_strided_slice %87 {offsets = [0, 1], sizes = [4, 1], strides = [1, 1]} : vector<4x4xf32> to vector<4x1xf32>
    %95 = vector.extract_strided_slice %88 {offsets = [1, 0], sizes = [1, 256], strides = [1, 1]} : vector<4x256xf32> to vector<1x256xf32>
    %96 = vector.broadcast %94 : vector<4x1xf32> to vector<4x256xf32>
    %97 = vector.broadcast %95 : vector<1x256xf32> to vector<4x256xf32>
    %98 = arith.mulf %96, %97 : vector<4x256xf32>
    %99 = arith.addf %93, %98 : vector<4x256xf32>
    %100 = vector.extract_strided_slice %87 {offsets = [0, 2], sizes = [4, 1], strides = [1, 1]} : vector<4x4xf32> to vector<4x1xf32>
    %101 = vector.extract_strided_slice %88 {offsets = [2, 0], sizes = [1, 256], strides = [1, 1]} : vector<4x256xf32> to vector<1x256xf32>
    %102 = vector.broadcast %100 : vector<4x1xf32> to vector<4x256xf32>
    %103 = vector.broadcast %101 : vector<1x256xf32> to vector<4x256xf32>
    %104 = arith.mulf %102, %103 : vector<4x256xf32>
    %105 = arith.addf %99, %104 : vector<4x256xf32>
    %106 = vector.extract_strided_slice %87 {offsets = [0, 3], sizes = [4, 1], strides = [1, 1]} : vector<4x4xf32> to vector<4x1xf32>
    %107 = vector.extract_strided_slice %88 {offsets = [3, 0], sizes = [1, 256], strides = [1, 1]} : vector<4x256xf32> to vector<1x256xf32>
    %108 = vector.broadcast %106 : vector<4x1xf32> to vector<4x256xf32>
    %109 = vector.broadcast %107 : vector<1x256xf32> to vector<4x256xf32>
    %110 = arith.mulf %108, %109 : vector<4x256xf32>
    %111 = arith.addf %105, %110 : vector<4x256xf32>
    %112 = vector.extract_strided_slice %86 {offsets = [4, 0], sizes = [4, 256], strides = [1, 1]} : vector<8x256xf32> to vector<4x256xf32>
    %113 = vector.extract_strided_slice %87 {offsets = [0, 0], sizes = [4, 1], strides = [1, 1]} : vector<4x4xf32> to vector<4x1xf32>
    %114 = vector.extract_strided_slice %112 {offsets = [0, 0], sizes = [1, 256], strides = [1, 1]} : vector<4x256xf32> to vector<1x256xf32>
    %115 = vector.broadcast %113 : vector<4x1xf32> to vector<4x256xf32>
    %116 = vector.broadcast %114 : vector<1x256xf32> to vector<4x256xf32>
    %117 = arith.mulf %115, %116 : vector<4x256xf32>
    %118 = vector.extract_strided_slice %87 {offsets = [0, 1], sizes = [4, 1], strides = [1, 1]} : vector<4x4xf32> to vector<4x1xf32>
    %119 = vector.extract_strided_slice %112 {offsets = [1, 0], sizes = [1, 256], strides = [1, 1]} : vector<4x256xf32> to vector<1x256xf32>
    %120 = vector.broadcast %118 : vector<4x1xf32> to vector<4x256xf32>
    %121 = vector.broadcast %119 : vector<1x256xf32> to vector<4x256xf32>
    %122 = arith.mulf %120, %121 : vector<4x256xf32>
    %123 = arith.addf %117, %122 : vector<4x256xf32>
    %124 = vector.extract_strided_slice %87 {offsets = [0, 2], sizes = [4, 1], strides = [1, 1]} : vector<4x4xf32> to vector<4x1xf32>
    %125 = vector.extract_strided_slice %112 {offsets = [2, 0], sizes = [1, 256], strides = [1, 1]} : vector<4x256xf32> to vector<1x256xf32>
    %126 = vector.broadcast %124 : vector<4x1xf32> to vector<4x256xf32>
    %127 = vector.broadcast %125 : vector<1x256xf32> to vector<4x256xf32>
    %128 = arith.mulf %126, %127 : vector<4x256xf32>
    %129 = arith.addf %123, %128 : vector<4x256xf32>
    %130 = vector.extract_strided_slice %87 {offsets = [0, 3], sizes = [4, 1], strides = [1, 1]} : vector<4x4xf32> to vector<4x1xf32>
    %131 = vector.extract_strided_slice %112 {offsets = [3, 0], sizes = [1, 256], strides = [1, 1]} : vector<4x256xf32> to vector<1x256xf32>
    %132 = vector.broadcast %130 : vector<4x1xf32> to vector<4x256xf32>
    %133 = vector.broadcast %131 : vector<1x256xf32> to vector<4x256xf32>
    %134 = arith.mulf %132, %133 : vector<4x256xf32>
    %135 = arith.addf %129, %134 : vector<4x256xf32>
    %c0_17 = arith.constant 0 : index
    %c0_18 = arith.constant 0 : index
    %136 = vector.load %arg4[%c0_17, %c0_18] : memref<4x1xf32, #tpu.memory_space<vmem>>, vector<4x1xf32>
    %c0_19 = arith.constant 0 : index
    %c0_20 = arith.constant 0 : index
    %137 = vector.load %arg5[%c0_19, %c0_20] : memref<4x1xf32, #tpu.memory_space<vmem>>, vector<4x1xf32>
    %cst_21 = arith.constant dense<0.000000e+00> : vector<4xf32>
    %138 = vector.multi_reduction <add>, %111, %cst_21 [1] : vector<4x256xf32> to vector<4xf32>
    %139 = vector.shape_cast %138 : vector<4xf32> to vector<4x1xf32>
    %140 = arith.mulf %111, %111 : vector<4x256xf32>
    %cst_22 = arith.constant dense<0.000000e+00> : vector<4xf32>
    %141 = vector.multi_reduction <add>, %140, %cst_22 [1] : vector<4x256xf32> to vector<4xf32>
    %142 = vector.shape_cast %141 : vector<4xf32> to vector<4x1xf32>
    %cst_23 = arith.constant dense<0.000000e+00> : vector<4xf32>
    %143 = vector.multi_reduction <add>, %135, %cst_23 [1] : vector<4x256xf32> to vector<4xf32>
    %144 = vector.shape_cast %143 : vector<4xf32> to vector<4x1xf32>
    %145 = arith.addf %139, %144 : vector<4x1xf32>
    %146 = arith.mulf %135, %135 : vector<4x256xf32>
    %cst_24 = arith.constant dense<0.000000e+00> : vector<4xf32>
    %147 = vector.multi_reduction <add>, %146, %cst_24 [1] : vector<4x256xf32> to vector<4xf32>
    %148 = vector.shape_cast %147 : vector<4xf32> to vector<4x1xf32>
    %149 = arith.addf %142, %148 : vector<4x1xf32>
    %cst_25 = arith.constant 0.001953125 : f32
    %150 = vector.broadcast %cst_25 : f32 to vector<4x1xf32>
    %151 = arith.mulf %145, %150 : vector<4x1xf32>
    %cst_26 = arith.constant 0.001953125 : f32
    %152 = vector.broadcast %cst_26 : f32 to vector<4x1xf32>
    %153 = arith.mulf %149, %152 : vector<4x1xf32>
    %154 = arith.mulf %151, %151 : vector<4x1xf32>
    %155 = arith.subf %153, %154 : vector<4x1xf32>
    %cst_27 = arith.constant 0.000000e+00 : f32
    %156 = vector.broadcast %cst_27 : f32 to vector<4x1xf32>
    %157 = arith.maximumf %155, %156 : vector<4x1xf32>
    %cst_28 = arith.constant 9.99999974E-6 : f32
    %158 = vector.broadcast %cst_28 : f32 to vector<4x1xf32>
    %159 = arith.addf %157, %158 : vector<4x1xf32>
    %160 = math.rsqrt %159 : vector<4x1xf32>
    %161 = arith.mulf %136, %160 : vector<4x1xf32>
    %162 = arith.mulf %151, %161 : vector<4x1xf32>
    %163 = arith.subf %137, %162 : vector<4x1xf32>
    %164 = vector.broadcast %161 : vector<4x1xf32> to vector<4x256xf32>
    %165 = arith.mulf %111, %164 : vector<4x256xf32>
    %166 = vector.broadcast %163 : vector<4x1xf32> to vector<4x256xf32>
    %167 = arith.addf %165, %166 : vector<4x256xf32>
    %cst_29 = arith.constant 0.000000e+00 : f32
    %168 = vector.broadcast %cst_29 : f32 to vector<4x256xf32>
    %169 = arith.maximumf %167, %168 : vector<4x256xf32>
    %c0_30 = arith.constant 0 : index
    %c17_31 = arith.constant 17 : index
    %170 = vector.load %arg11[%c0_30, %c17_31] : memref<8x290xf32, #tpu.memory_space<vmem>>, vector<4x256xf32>
    tpu.vector_store %arg11[%c0_30, %c17_31], %169 {strides = array<i32>} : memref<8x290xf32, #tpu.memory_space<vmem>>, vector<4x256xf32>,
    %171 = vector.broadcast %161 : vector<4x1xf32> to vector<4x256xf32>
    %172 = arith.mulf %135, %171 : vector<4x256xf32>
    %173 = vector.broadcast %163 : vector<4x1xf32> to vector<4x256xf32>
    %174 = arith.addf %172, %173 : vector<4x256xf32>
    %cst_32 = arith.constant 0.000000e+00 : f32
    %175 = vector.broadcast %cst_32 : f32 to vector<4x256xf32>
    %176 = arith.maximumf %174, %175 : vector<4x256xf32>
    %c4 = arith.constant 4 : index
    %c17_33 = arith.constant 17 : index
    %177 = vector.load %arg11[%c4, %c17_33] : memref<8x290xf32, #tpu.memory_space<vmem>>, vector<4x256xf32>
    tpu.vector_store %arg11[%c4, %c17_33], %176 {strides = array<i32>} : memref<8x290xf32, #tpu.memory_space<vmem>>, vector<4x256xf32>,
    %c0_34 = arith.constant 0 : index
    %c0_35 = arith.constant 0 : index
    %178 = vector.load %arg6[%c0_34, %c0_35] : memref<8x9xf32, #tpu.memory_space<vmem>>, vector<8x9xf32>
    %c0_36 = arith.constant 0 : index
    %c0_37 = arith.constant 0 : index
    %179 = vector.load %arg11[%c0_36, %c0_37] : memref<8x290xf32, #tpu.memory_space<vmem>>, vector<8x290xf32>
    %180 = vector.extract_strided_slice %179 {offsets = [0, 0], sizes = [8, 256], strides = [1, 1]} : vector<8x290xf32> to vector<8x256xf32>
    %181 = vector.extract_strided_slice %178 {offsets = [0, 0], sizes = [8, 1], strides = [1, 1]} : vector<8x9xf32> to vector<8x1xf32>
    %182 = vector.broadcast %181 : vector<8x1xf32> to vector<8x256xf32>
    %183 = arith.mulf %180, %182 : vector<8x256xf32>
    %184 = vector.extract_strided_slice %179 {offsets = [0, 16], sizes = [8, 256], strides = [1, 1]} : vector<8x290xf32> to vector<8x256xf32>
    %185 = vector.extract_strided_slice %178 {offsets = [0, 3], sizes = [8, 1], strides = [1, 1]} : vector<8x9xf32> to vector<8x1xf32>
    %186 = vector.broadcast %185 : vector<8x1xf32> to vector<8x256xf32>
    %187 = arith.mulf %184, %186 : vector<8x256xf32>
    %188 = arith.addf %183, %187 : vector<8x256xf32>
    %189 = vector.extract_strided_slice %179 {offsets = [0, 32], sizes = [8, 256], strides = [1, 1]} : vector<8x290xf32> to vector<8x256xf32>
    %190 = vector.extract_strided_slice %178 {offsets = [0, 6], sizes = [8, 1], strides = [1, 1]} : vector<8x9xf32> to vector<8x1xf32>
    %191 = vector.broadcast %190 : vector<8x1xf32> to vector<8x256xf32>
    %192 = arith.mulf %189, %191 : vector<8x256xf32>
    %193 = arith.addf %188, %192 : vector<8x256xf32>
    %194 = vector.broadcast %23 : vector<1x256xf32> to vector<8x256xf32>
    %195 = arith.mulf %193, %194 : vector<8x256xf32>
    %196 = vector.extract_strided_slice %179 {offsets = [0, 1], sizes = [8, 256], strides = [1, 1]} : vector<8x290xf32> to vector<8x256xf32>
    %197 = vector.extract_strided_slice %178 {offsets = [0, 1], sizes = [8, 1], strides = [1, 1]} : vector<8x9xf32> to vector<8x1xf32>
    %198 = vector.broadcast %197 : vector<8x1xf32> to vector<8x256xf32>
    %199 = arith.mulf %196, %198 : vector<8x256xf32>
    %200 = vector.extract_strided_slice %179 {offsets = [0, 17], sizes = [8, 256], strides = [1, 1]} : vector<8x290xf32> to vector<8x256xf32>
    %201 = vector.extract_strided_slice %178 {offsets = [0, 4], sizes = [8, 1], strides = [1, 1]} : vector<8x9xf32> to vector<8x1xf32>
    %202 = vector.broadcast %201 : vector<8x1xf32> to vector<8x256xf32>
    %203 = arith.mulf %200, %202 : vector<8x256xf32>
    %204 = arith.addf %199, %203 : vector<8x256xf32>
    %205 = vector.extract_strided_slice %179 {offsets = [0, 33], sizes = [8, 256], strides = [1, 1]} : vector<8x290xf32> to vector<8x256xf32>
    %206 = vector.extract_strided_slice %178 {offsets = [0, 7], sizes = [8, 1], strides = [1, 1]} : vector<8x9xf32> to vector<8x1xf32>
    %207 = vector.broadcast %206 : vector<8x1xf32> to vector<8x256xf32>
    %208 = arith.mulf %205, %207 : vector<8x256xf32>
    %209 = arith.addf %204, %208 : vector<8x256xf32>
    %210 = vector.extract_strided_slice %179 {offsets = [0, 2], sizes = [8, 256], strides = [1, 1]} : vector<8x290xf32> to vector<8x256xf32>
    %211 = vector.extract_strided_slice %178 {offsets = [0, 2], sizes = [8, 1], strides = [1, 1]} : vector<8x9xf32> to vector<8x1xf32>
    %212 = vector.broadcast %211 : vector<8x1xf32> to vector<8x256xf32>
    %213 = arith.mulf %210, %212 : vector<8x256xf32>
    %214 = vector.extract_strided_slice %179 {offsets = [0, 18], sizes = [8, 256], strides = [1, 1]} : vector<8x290xf32> to vector<8x256xf32>
    %215 = vector.extract_strided_slice %178 {offsets = [0, 5], sizes = [8, 1], strides = [1, 1]} : vector<8x9xf32> to vector<8x1xf32>
    %216 = vector.broadcast %215 : vector<8x1xf32> to vector<8x256xf32>
    %217 = arith.mulf %214, %216 : vector<8x256xf32>
    %218 = arith.addf %213, %217 : vector<8x256xf32>
    %219 = vector.extract_strided_slice %179 {offsets = [0, 34], sizes = [8, 256], strides = [1, 1]} : vector<8x290xf32> to vector<8x256xf32>
    %220 = vector.extract_strided_slice %178 {offsets = [0, 8], sizes = [8, 1], strides = [1, 1]} : vector<8x9xf32> to vector<8x1xf32>
    %221 = vector.broadcast %220 : vector<8x1xf32> to vector<8x256xf32>
    %222 = arith.mulf %219, %221 : vector<8x256xf32>
    %223 = arith.addf %218, %222 : vector<8x256xf32>
    %224 = vector.broadcast %30 : vector<1x256xf32> to vector<8x256xf32>
    %225 = arith.mulf %223, %224 : vector<8x256xf32>
    %226 = arith.addf %195, %209 : vector<8x256xf32>
    %227 = arith.addf %226, %225 : vector<8x256xf32>
    %c0_38 = arith.constant 0 : index
    %c0_39 = arith.constant 0 : index
    %228 = vector.load %arg7[%c0_38, %c0_39] : memref<8x4xf32, #tpu.memory_space<vmem>>, vector<8x4xf32>
    %229 = vector.extract_strided_slice %227 {offsets = [0, 0], sizes = [4, 256], strides = [1, 1]} : vector<8x256xf32> to vector<4x256xf32>
    %230 = vector.extract_strided_slice %228 {offsets = [0, 0], sizes = [8, 1], strides = [1, 1]} : vector<8x4xf32> to vector<8x1xf32>
    %231 = vector.extract_strided_slice %229 {offsets = [0, 0], sizes = [1, 256], strides = [1, 1]} : vector<4x256xf32> to vector<1x256xf32>
    %232 = vector.broadcast %230 : vector<8x1xf32> to vector<8x256xf32>
    %233 = vector.broadcast %231 : vector<1x256xf32> to vector<8x256xf32>
    %234 = arith.mulf %232, %233 : vector<8x256xf32>
    %235 = vector.extract_strided_slice %228 {offsets = [0, 1], sizes = [8, 1], strides = [1, 1]} : vector<8x4xf32> to vector<8x1xf32>
    %236 = vector.extract_strided_slice %229 {offsets = [1, 0], sizes = [1, 256], strides = [1, 1]} : vector<4x256xf32> to vector<1x256xf32>
    %237 = vector.broadcast %235 : vector<8x1xf32> to vector<8x256xf32>
    %238 = vector.broadcast %236 : vector<1x256xf32> to vector<8x256xf32>
    %239 = arith.mulf %237, %238 : vector<8x256xf32>
    %240 = arith.addf %234, %239 : vector<8x256xf32>
    %241 = vector.extract_strided_slice %228 {offsets = [0, 2], sizes = [8, 1], strides = [1, 1]} : vector<8x4xf32> to vector<8x1xf32>
    %242 = vector.extract_strided_slice %229 {offsets = [2, 0], sizes = [1, 256], strides = [1, 1]} : vector<4x256xf32> to vector<1x256xf32>
    %243 = vector.broadcast %241 : vector<8x1xf32> to vector<8x256xf32>
    %244 = vector.broadcast %242 : vector<1x256xf32> to vector<8x256xf32>
    %245 = arith.mulf %243, %244 : vector<8x256xf32>
    %246 = arith.addf %240, %245 : vector<8x256xf32>
    %247 = vector.extract_strided_slice %228 {offsets = [0, 3], sizes = [8, 1], strides = [1, 1]} : vector<8x4xf32> to vector<8x1xf32>
    %248 = vector.extract_strided_slice %229 {offsets = [3, 0], sizes = [1, 256], strides = [1, 1]} : vector<4x256xf32> to vector<1x256xf32>
    %249 = vector.broadcast %247 : vector<8x1xf32> to vector<8x256xf32>
    %250 = vector.broadcast %248 : vector<1x256xf32> to vector<8x256xf32>
    %251 = arith.mulf %249, %250 : vector<8x256xf32>
    %252 = arith.addf %246, %251 : vector<8x256xf32>
    %253 = vector.extract_strided_slice %227 {offsets = [4, 0], sizes = [4, 256], strides = [1, 1]} : vector<8x256xf32> to vector<4x256xf32>
    %254 = vector.extract_strided_slice %228 {offsets = [0, 0], sizes = [8, 1], strides = [1, 1]} : vector<8x4xf32> to vector<8x1xf32>
    %255 = vector.extract_strided_slice %253 {offsets = [0, 0], sizes = [1, 256], strides = [1, 1]} : vector<4x256xf32> to vector<1x256xf32>
    %256 = vector.broadcast %254 : vector<8x1xf32> to vector<8x256xf32>
    %257 = vector.broadcast %255 : vector<1x256xf32> to vector<8x256xf32>
    %258 = arith.mulf %256, %257 : vector<8x256xf32>
    %259 = vector.extract_strided_slice %228 {offsets = [0, 1], sizes = [8, 1], strides = [1, 1]} : vector<8x4xf32> to vector<8x1xf32>
    %260 = vector.extract_strided_slice %253 {offsets = [1, 0], sizes = [1, 256], strides = [1, 1]} : vector<4x256xf32> to vector<1x256xf32>
    %261 = vector.broadcast %259 : vector<8x1xf32> to vector<8x256xf32>
    %262 = vector.broadcast %260 : vector<1x256xf32> to vector<8x256xf32>
    %263 = arith.mulf %261, %262 : vector<8x256xf32>
    %264 = arith.addf %258, %263 : vector<8x256xf32>
    %265 = vector.extract_strided_slice %228 {offsets = [0, 2], sizes = [8, 1], strides = [1, 1]} : vector<8x4xf32> to vector<8x1xf32>
    %266 = vector.extract_strided_slice %253 {offsets = [2, 0], sizes = [1, 256], strides = [1, 1]} : vector<4x256xf32> to vector<1x256xf32>
    %267 = vector.broadcast %265 : vector<8x1xf32> to vector<8x256xf32>
    %268 = vector.broadcast %266 : vector<1x256xf32> to vector<8x256xf32>
    %269 = arith.mulf %267, %268 : vector<8x256xf32>
    %270 = arith.addf %264, %269 : vector<8x256xf32>
    %271 = vector.extract_strided_slice %228 {offsets = [0, 3], sizes = [8, 1], strides = [1, 1]} : vector<8x4xf32> to vector<8x1xf32>
    %272 = vector.extract_strided_slice %253 {offsets = [3, 0], sizes = [1, 256], strides = [1, 1]} : vector<4x256xf32> to vector<1x256xf32>
    %273 = vector.broadcast %271 : vector<8x1xf32> to vector<8x256xf32>
    %274 = vector.broadcast %272 : vector<1x256xf32> to vector<8x256xf32>
    %275 = arith.mulf %273, %274 : vector<8x256xf32>
    %276 = arith.addf %270, %275 : vector<8x256xf32>
    %c0_40 = arith.constant 0 : index
    %c0_41 = arith.constant 0 : index
    %277 = vector.load %arg8[%c0_40, %c0_41] : memref<8x1xf32, #tpu.memory_space<vmem>>, vector<8x1xf32>
    %c0_42 = arith.constant 0 : index
    %c0_43 = arith.constant 0 : index
    %278 = vector.load %arg9[%c0_42, %c0_43] : memref<8x1xf32, #tpu.memory_space<vmem>>, vector<8x1xf32>
    %cst_44 = arith.constant dense<0.000000e+00> : vector<8xf32>
    %279 = vector.multi_reduction <add>, %252, %cst_44 [1] : vector<8x256xf32> to vector<8xf32>
    %280 = vector.shape_cast %279 : vector<8xf32> to vector<8x1xf32>
    %281 = arith.mulf %252, %252 : vector<8x256xf32>
    %cst_45 = arith.constant dense<0.000000e+00> : vector<8xf32>
    %282 = vector.multi_reduction <add>, %281, %cst_45 [1] : vector<8x256xf32> to vector<8xf32>
    %283 = vector.shape_cast %282 : vector<8xf32> to vector<8x1xf32>
    %cst_46 = arith.constant dense<0.000000e+00> : vector<8xf32>
    %284 = vector.multi_reduction <add>, %276, %cst_46 [1] : vector<8x256xf32> to vector<8xf32>
    %285 = vector.shape_cast %284 : vector<8xf32> to vector<8x1xf32>
    %286 = arith.addf %280, %285 : vector<8x1xf32>
    %287 = arith.mulf %276, %276 : vector<8x256xf32>
    %cst_47 = arith.constant dense<0.000000e+00> : vector<8xf32>
    %288 = vector.multi_reduction <add>, %287, %cst_47 [1] : vector<8x256xf32> to vector<8xf32>
    %289 = vector.shape_cast %288 : vector<8xf32> to vector<8x1xf32>
    %290 = arith.addf %283, %289 : vector<8x1xf32>
    %cst_48 = arith.constant 0.001953125 : f32
    %291 = vector.broadcast %cst_48 : f32 to vector<8x1xf32>
    %292 = arith.mulf %286, %291 : vector<8x1xf32>
    %cst_49 = arith.constant 0.001953125 : f32
    %293 = vector.broadcast %cst_49 : f32 to vector<8x1xf32>
    %294 = arith.mulf %290, %293 : vector<8x1xf32>
    %295 = arith.mulf %292, %292 : vector<8x1xf32>
    %296 = arith.subf %294, %295 : vector<8x1xf32>
    %cst_50 = arith.constant 0.000000e+00 : f32
    %297 = vector.broadcast %cst_50 : f32 to vector<8x1xf32>
    %298 = arith.maximumf %296, %297 : vector<8x1xf32>
    %cst_51 = arith.constant 9.99999974E-6 : f32
    %299 = vector.broadcast %cst_51 : f32 to vector<8x1xf32>
    %300 = arith.addf %298, %299 : vector<8x1xf32>
    %301 = math.rsqrt %300 : vector<8x1xf32>
    %302 = arith.mulf %277, %301 : vector<8x1xf32>
    %303 = arith.mulf %292, %302 : vector<8x1xf32>
    %304 = arith.subf %278, %303 : vector<8x1xf32>
    %305 = vector.broadcast %302 : vector<8x1xf32> to vector<8x256xf32>
    %306 = arith.mulf %252, %305 : vector<8x256xf32>
    %307 = vector.broadcast %304 : vector<8x1xf32> to vector<8x256xf32>
    %308 = arith.addf %306, %307 : vector<8x256xf32>
    %c0_52 = arith.constant 0 : index
    %c0_53 = arith.constant 0 : index
    %309 = vector.load %arg10[%c0_52, %c0_53] : memref<16x256xf32, #tpu.memory_space<vmem>>, vector<8x256xf32>
    tpu.vector_store %arg10[%c0_52, %c0_53], %308 {strides = array<i32>} : memref<16x256xf32, #tpu.memory_space<vmem>>, vector<8x256xf32>,
    %310 = vector.broadcast %302 : vector<8x1xf32> to vector<8x256xf32>
    %311 = arith.mulf %276, %310 : vector<8x256xf32>
    %312 = vector.broadcast %304 : vector<8x1xf32> to vector<8x256xf32>
    %313 = arith.addf %311, %312 : vector<8x256xf32>
    %c8 = arith.constant 8 : index
    %c0_54 = arith.constant 0 : index
    %314 = vector.load %arg10[%c8, %c0_54] : memref<16x256xf32, #tpu.memory_space<vmem>>, vector<8x256xf32>
    tpu.vector_store %arg10[%c8, %c0_54], %313 {strides = array<i32>} : memref<16x256xf32, #tpu.memory_space<vmem>>, vector<8x256xf32>,
    return
  }
  func.func @transform_0(%arg0: i32) -> (i32, i32) {
    %c0_i32 = arith.constant 0 : i32
    %c0_i32_0 = arith.constant 0 : i32
    %c0_i32_1 = arith.constant 0 : i32
    return %c0_i32, %c0_i32_0 : i32, i32
  }
  func.func @transform_1(%arg0: i32) -> (i32, i32) {
    %c0_i32 = arith.constant 0 : i32
    %c0_i32_0 = arith.constant 0 : i32
    %c0_i32_1 = arith.constant 0 : i32
    return %c0_i32, %c0_i32_0 : i32, i32
  }
  func.func @transform_2(%arg0: i32) -> (i32, i32) {
    %c0_i32 = arith.constant 0 : i32
    %c0_i32_0 = arith.constant 0 : i32
    %c0_i32_1 = arith.constant 0 : i32
    return %c0_i32, %c0_i32_0 : i32, i32
  }
  func.func @transform_3(%arg0: i32) -> (i32, i32) {
    %c0_i32 = arith.constant 0 : i32
    %c0_i32_0 = arith.constant 0 : i32
    %c0_i32_1 = arith.constant 0 : i32
    return %c0_i32, %c0_i32_0 : i32, i32
  }
  func.func @transform_4(%arg0: i32) -> (i32, i32) {
    %c0_i32 = arith.constant 0 : i32
    %c0_i32_0 = arith.constant 0 : i32
    %c0_i32_1 = arith.constant 0 : i32
    return %c0_i32, %c0_i32_0 : i32, i32
  }
  func.func @transform_5(%arg0: i32) -> (i32, i32) {
    %c0_i32 = arith.constant 0 : i32
    %c0_i32_0 = arith.constant 0 : i32
    %c0_i32_1 = arith.constant 0 : i32
    return %c0_i32, %c0_i32_0 : i32, i32
  }
  func.func @transform_6(%arg0: i32) -> (i32, i32) {
    %c0_i32 = arith.constant 0 : i32
    %c0_i32_0 = arith.constant 0 : i32
    %c0_i32_1 = arith.constant 0 : i32
    return %c0_i32, %c0_i32_0 : i32, i32
  }
  func.func @transform_7(%arg0: i32) -> (i32, i32) {
    %c0_i32 = arith.constant 0 : i32
    %c0_i32_0 = arith.constant 0 : i32
    %c0_i32_1 = arith.constant 0 : i32
    return %c0_i32, %c0_i32_0 : i32, i32
  }
  func.func @transform_8(%arg0: i32) -> (i32, i32) {
    %c0_i32 = arith.constant 0 : i32
    %c0_i32_0 = arith.constant 0 : i32
    %c0_i32_1 = arith.constant 0 : i32
    return %c0_i32, %c0_i32_0 : i32, i32
  }
  func.func @transform_9(%arg0: i32) -> (i32, i32) {
    %c0_i32 = arith.constant 0 : i32
    %c0_i32_0 = arith.constant 0 : i32
    %c0_i32_1 = arith.constant 0 : i32
    return %c0_i32, %c0_i32_0 : i32, i32
  }
}

</mosaic_0001>

<bundles_post_ra>
// kernel: sep_conv.1
= control target key start
LH: loop header
LB: loop body
LE: loop exit
PB: predicated region body
PF: predicated region fallthrough
CT: control target
= control target key end

     0   :  { %v865_v0 = vmov 4   ;;  %v866_v3 = vmov 7   ;;  %v867_v5 = vmov 3   ;;  %s868_s13 = smov 17   ;;  %v869_v8 = vmov 5   ;;  %s877_s15 = smov 96   ;;  %s1253_s1 = inlined_call_operand.vmem [shape: f32[8,9], index: 1, kind: input, shape index: {}]   ;;  %s1254_s0 = inlined_call_operand.vmem [shape: f32[8,256], index: 0, kind: input, shape index: {}]   ;;  %s1255_s2 = inlined_call_operand.vmem [shape: f32[4,4], index: 2, kind: input, shape index: {}]   ;;  %s1256_s3 = inlined_call_operand.vmem [shape: f32[4,1], index: 3, kind: input, shape index: {}]   ;;  %s1257_s4 = inlined_call_operand.vmem [shape: f32[4,1], index: 4, kind: input, shape index: {}]   ;;  %s1258_s5 = inlined_call_operand.vmem [shape: f32[8,9], index: 5, kind: input, shape index: {}]   ;;  %s1259_s6 = inlined_call_operand.vmem [shape: f32[8,4], index: 6, kind: input, shape index: {}]   ;;  %s1260_s7 = inlined_call_operand.vmem [shape: f32[8,1], index: 7, kind: input, shape index: {}]   ;;  %s1261_s8 = inlined_call_operand.vmem [shape: f32[8,1], index: 8, kind: input, shape index: {}]   ;;  %s1262_s9 = inlined_call_operand.vmem [shape: f32[16,256], index: 9, kind: output, shape index: {}]  }
   0x1   :  { %828 = vset.pattern.permute.xlu1 %v865_v0  ;;  %v935_v1 = vld [vmem:[%s1253_s1] sm:$0xff]  ;;  %830 = vset.pattern.permute.xlu2 %v866_v3  ;;  %v84_v6 = vld [vmem:[%s1254_s0 + $0x8] sm:$0xff]  ;;  %v870_v9 = vmov 8   ;;  %v871_v10 = vmov 6   ;;  %v872_v11 = vmov 1   ;;  %v873_v12 = vmov 2  }
   0x2   :  { %v83_v2 = vld [vmem:[%s1254_s0] sm:$0xff]  ;;  %169 = vperm.xlu1 %828, %v935_v1   ;;  %193 = vperm.xlu2 %830, %v935_v1   ;;  %v86_v7 = vmax.f32 %v84_v6, 0.0  ;;  %v874_v13 = vmov 0.0   ;;  %vm81_vm0 = vcmask 277504   ;;  %vm98_vm1 = vcmask 1047688   ;;  %s875_s0 = smov 112  }
   0x3   :  { %v85_v4 = vmax.f32 %v83_v2, 0.0  ;;  %832 = vset.pattern.permute.xlu0 %v867_v5  ;;  %79 = vst [vmem:[#allocation2] sm:$0xff] %v874_v13  ;;  %vm93_vm2 = vcmask 138240   ;;  %v876_v21 = vmov 0   ;;  %v32_v25 = vlaneseq  ;;  %s878_s16 = smov 2   ;;  %s879_s17 = smov 127  }
   0x4   :  { %82 = vst.msk [vmem:[#allocation2 + $0x10] sm:$0xff] %vm81_vm0, %v874_v13  ;;  %vm129_vm5 = vcmask 916480   ;;  %vm152_vm6 = vcmask 785408   ;;  %vm277_vm7 = vcmask 15360   ;;  %s880_s18 = smov 126   ;;  %vm294_vm10 = vcmask 1039360  }
   0x5   :  { %89 = vrot.lane.b32.xlu0 %v85_v4, %s868_s13  ;;  %v983_v28 = vand.u32 127, %v32_v25  ;;  %vm310_vm11 = vcmask 1031168   ;;  %vm381_vm12 = vcmask 1043456   ;;  %vm479_vm0 = vcmask 138244  }
   0x7   :  { %v987_v31 = vadd.s32 128, %v983_v28  ;;  %v39_v34 = vand.u32 15, %v983_v28 }
   0x9   :  { %v46_v35 = vand.u32 15, %v987_v31  ;;  %vm71_vm3 = vcmp.lt.s32.totalorder %v39_v34, 15  ;;  %vm59_vm8 = vcmp.ge.s32.totalorder %v39_v34, 1 }
   0xa   :  { %829 = vset.pattern.permute.xlu1 %v869_v8  ;;  %831 = vset.pattern.permute.xlu2 %v870_v9  ;;  %v810_v40 = vsel %vm71_vm3, 1.0, %v874_v13  ;;  %vm453_vm3 = vcmask 1043592  }
   0xb   :  { %224 = vperm.xlu1 %829, %v935_v1   ;;  %248 = vperm.xlu2 %831, %v935_v1   ;;  %vm72_vm4 = vcmp.lt.s32.totalorder %v46_v35, 15  ;;  %vm60_vm9 = vcmp.ge.s32.totalorder %v46_v35, 1 }
   0xc   :  { %v811_v41 = vsel %vm72_vm4, 1.0, %v874_v13  ;;  %vm476_vm4 = vcmask 1047692  }
   0xd   :  { %91 = vrot.lane.b32.xlu0 %v86_v7, %s868_s13  ;;  %v836_v42 = vpack.i.bf16 %v811_v41, %v810_v40 }
  0x13   :  { %833 = vset.pattern.permute.xlu1 %v871_v10  ;;  %834 = vset.pattern.permute.xlu2 %v872_v11 }
  0x14   :  { %137 = vperm.xlu1 %833, %v935_v1   ;;  %162 = vperm.xlu2 %834, %v935_v1  }
  0x15   :  { %114 = vperm.xlu0 %832, %v935_v1  }
  0x1c   :  { %835 = vset.pattern.permute.xlu1 %v873_v12  ;;  %842 = vset.pattern.permute.xlu2 %v876_v21 }
  0x1d   :  { %217 = vperm.xlu1 %835, %v935_v1   ;;  %841 = vset.pattern.permute.xlu0 %v876_v21 }
  0x5c   :  { %v194_v29 = vpop.permute.xlu2 %193 }
  0x65   :  { %v249_v36 = vpop.permute.xlu2 %248 }
  0x6e   :  { %v163_v52 = vpop.permute.xlu2 %162 }
  0x74   :  { %v170_v15 = vpop.permute.xlu1 %169 }
  0x77   :  { %v90_v14 = vpop.permute.xlu0 %89 }
  0x78   :  { %99 = vst.msk [vmem:[#allocation2] sm:$0xff] %vm98_vm1, %v90_v14  ;;  %vm456_vm1 = vcmask 134144  }
  0x7d   :  { %v225_v22 = vpop.permute.xlu1 %224 }
  0x7f   :  { %v962_v16 = vld [vmem:[#allocation2] sm:$0xff]  ;;  %v92_v17 = vpop.permute.xlu0 %91 }
  0x80   :  { %v965_v18 = vsel %vm93_vm2, %v90_v14, %v92_v17  ;;  %101 = vst.msk [vmem:[#allocation2 + $0x10] sm:$0xff] %vm93_vm2, %v92_v17  ;;  %v172_v19 = vmul.f32 %v170_v15, %v962_v16  ;;  %v227_v24 = vmul.f32 %v225_v22, %v962_v16  ;;  %v196_v30 = vmul.f32 %v194_v29, %v962_v16 }
  0x81   :  { %100 = vst [vmem:[#allocation2 + $0x8] sm:$0xff] %v965_v18  ;;  %v173_v20 = vmul.f32 %v170_v15, %v965_v18  ;;  %v228_v27 = vmul.f32 %v225_v22, %v965_v18  ;;  %v197_v33 = vmul.f32 %v194_v29, %v965_v18  ;;  %v251_v37 = vmul.f32 %v249_v36, %v962_v16 }
  0x82   :  { %178 = vrot.lane.b32.xlu2 %v172_v19, %s875_s0  ;;  %v252_v39 = vmul.f32 %v249_v36, %v965_v18  ;;  %v165_v62 = vmul.f32 %v163_v52, %v962_v16  ;;  %v166_v19 = vmul.f32 %v163_v52, %v965_v18 }
  0x83   :  { %180 = vrot.lane.b32.xlu0 %v173_v20, %s875_s0 }
  0x86   :  { %v138_v44 = vpop.permute.xlu1 %137 }
  0x87   :  { %v975_v23 = vld [vmem:[#allocation2 + $0x10] sm:$0xff]  ;;  %v115_v45 = vpop.permute.xlu0 %114  ;;  %v140_v46 = vmul.f32 %v138_v44, %v962_v16  ;;  %v141_v47 = vmul.f32 %v138_v44, %v965_v18 }
  0x88   :  { %v174_v26 = vmul.f32 %v170_v15, %v975_v23  ;;  %v229_v32 = vmul.f32 %v225_v22, %v975_v23  ;;  %v198_v38 = vmul.f32 %v194_v29, %v975_v23  ;;  %v253_v43 = vmul.f32 %v249_v36, %v975_v23 }
  0x89   :  { %v117_v48 = vmul.f32 %v115_v45, %v962_v16  ;;  %v118_v49 = vmul.f32 %v115_v45, %v965_v18  ;;  %v119_v50 = vmul.f32 %v115_v45, %v975_v23  ;;  %v142_v51 = vmul.f32 %v138_v44, %v975_v23 }
  0x8a   :  { %233 = vrot.lane.b32.xlu2 %v227_v24, %s875_s0  ;;  %182 = vrot.lane.b32.xlu1 %v174_v26, %s875_s0  ;;  %v167_v7 = vmul.f32 %v163_v52, %v975_v23 }
  0x8b   :  { %235 = vrot.lane.b32.xlu0 %v228_v27, %s875_s0 }
  0x8f   :  { %v218_v55 = vpop.permute.xlu1 %217 }
  0x90   :  { %v220_v17 = vmul.f32 %v218_v55, %v962_v16 }
  0x92   :  { %202 = vrot.lane.b32.xlu2 %v196_v30, %s877_s15  ;;  %237 = vrot.lane.b32.xlu1 %v229_v32, %s875_s0 }
  0x93   :  { %204 = vrot.lane.b32.xlu0 %v197_v33, %s877_s15 }
  0x9a   :  { %257 = vrot.lane.b32.xlu2 %v251_v37, %s877_s15  ;;  %206 = vrot.lane.b32.xlu1 %v198_v38, %s877_s15 }
  0x9b   :  { %259 = vrot.lane.b32.xlu0 %v252_v39, %s877_s15  ;;  %v222_v39 = vmul.f32 %v218_v55, %v975_v23 }
  0xa2   :  { %837 = vrot.lane.b32.xlu2 %v836_v42, %s878_s16  ;;  %261 = vrot.lane.b32.xlu1 %v253_v43, %s877_s15  ;;  %v221_v42 = vmul.f32 %v218_v55, %v965_v18 }
  0xa3   :  { %108 = vperm.xlu0 %841, %v935_v1  }
  0xaa   :  { %146 = vrot.lane.b32.xlu2 %v140_v46, %s877_s15  ;;  %123 = vrot.lane.b32.xlu1 %v117_v48, %s875_s0 }
  0xab   :  { %148 = vrot.lane.b32.xlu0 %v141_v47, %s877_s15 }
  0xac   :  { %843 = vset.pattern.permute.xlu0 %v872_v11 }
  0xb2   :  { %125 = vrot.lane.b32.xlu2 %v118_v49, %s875_s0  ;;  %127 = vrot.lane.b32.xlu1 %v119_v50, %s875_s0 }
  0xba   :  { %150 = vrot.lane.b32.xlu1 %v142_v51, %s877_s15  ;;  %v317_v51 = vld [vmem:[%s1255_s2] sm:$0xf] }
  0xdc   :  { %v179_v53 = vpop.permute.xlu2 %178 }
  0xe4   :  { %v234_v54 = vpop.permute.xlu2 %233 }
  0xec   :  { %v203_v57 = vpop.permute.xlu2 %202 }
  0xf4   :  { %v258_v60 = vpop.permute.xlu2 %257 }
  0xf5   :  { %v181_v56 = vpop.permute.xlu0 %180 }
  0xf6   :  { %v184_v61 = vsel %vm129_vm5, %v179_v53, %v181_v56 }
  0xf7   :  { %v189_v63 = vadd.f32 %v184_v61, %v165_v62 }
  0xfc   :  { %v183_v58 = vpop.permute.xlu1 %182  ;;  %v838_v20 = vpop.permute.xlu2 %837 }
  0xfd   :  { %v236_v59 = vpop.permute.xlu0 %235  ;;  %v185_v14 = vsel %vm129_vm5, %v181_v56, %v183_v58  ;;  %v191_v22 = vadd.f32 %v183_v58, %v167_v7  ;;  %v1033_v24 = vunpack.i.l.bf16 %v838_v20  ;;  %v1041_v40 = vunpack.i.h.bf16 %v838_v20 }
  0xfe   :  { %v239_v15 = vsel %vm129_vm5, %v234_v54, %v236_v59  ;;  %v190_v25 = vadd.f32 %v185_v14, %v166_v19 }
  0xff   :  { %v244_v26 = vadd.f32 %v239_v15, %v220_v17  ;;  %v1049_v48 = vsel %vm277_vm7, %v1033_v24, %v1041_v40  ;;  %v1076_v17 = vsel %vm60_vm9, 1.0, %v874_v13 }
 0x104   :  { %v238_v1 = vpop.permute.xlu1 %237  ;;  %v147_v53 = vpop.permute.xlu2 %146 }
 0x105   :  { %v205_v2 = vpop.permute.xlu0 %204  ;;  %v240_v41 = vsel %vm129_vm5, %v236_v59, %v238_v1  ;;  %v246_v43 = vadd.f32 %v238_v1, %v222_v39 }
 0x106   :  { %v208_v4 = vsel %vm152_vm6, %v203_v57, %v205_v2  ;;  %v245_v44 = vadd.f32 %v240_v41, %v221_v42 }
 0x107   :  { %v213_v6 = vadd.f32 %v208_v4, %v189_v63 }
 0x109   :  { %288 = vrot.lane.b32.xlu2 %v213_v6, %s879_s17 }
 0x10c   :  { %v207_v27 = vpop.permute.xlu1 %206  ;;  %v126_v56 = vpop.permute.xlu2 %125 }
 0x10d   :  { %v260_v29 = vpop.permute.xlu0 %259  ;;  %v215_v30 = vadd.f32 %v207_v27, %v191_v22  ;;  %v209_v32 = vsel %vm152_vm6, %v205_v2, %v207_v27 }
 0x10e   :  { %v263_v33 = vsel %vm152_vm6, %v258_v60, %v260_v29  ;;  %v214_v36 = vadd.f32 %v209_v32, %v190_v25 }
 0x10f   :  { %v268_v37 = vadd.f32 %v263_v33, %v244_v26  ;;  %292 = vrot.lane.b32.xlu1 %v215_v30, %s879_s17 }
 0x110   :  { %290 = vrot.lane.b32.xlu0 %v214_v36, %s879_s17 }
 0x111   :  { %v282_v38 = vmul.f32 %v1033_v24, %v268_v37 }
 0x113   :  { %304 = vrot.lane.b32.xlu2 %v282_v38, %s880_s18 }
 0x114   :  { %v262_v45 = vpop.permute.xlu1 %261 }
 0x115   :  { %v270_v46 = vadd.f32 %v262_v45, %v246_v43  ;;  %v264_v47 = vsel %vm152_vm6, %v260_v29, %v262_v45  ;;  %v109_v55 = vpop.permute.xlu0 %108 }
 0x116   :  { %v269_v23 = vadd.f32 %v264_v47, %v245_v44  ;;  %v111_v61 = vmul.f32 %v109_v55, %v962_v16  ;;  %v112_v63 = vmul.f32 %v109_v55, %v965_v18  ;;  %v1073_v18 = vsel %vm59_vm8, 1.0, %v874_v13 }
 0x117   :  { %v284_v49 = vmul.f32 %v1041_v40, %v270_v46 }
 0x118   :  { %v283_v50 = vmul.f32 %v1049_v48, %v269_v23 }
 0x119   :  { %308 = vrot.lane.b32.xlu1 %v284_v49, %s880_s18 }
 0x11a   :  { %306 = vrot.lane.b32.xlu0 %v283_v50, %s880_s18 }
 0x11b   :  { %320 = vperm.xlu2 %842, %v317_v51  }
 0x11c   :  { %v124_v52 = vpop.permute.xlu1 %123 }
 0x11d   :  { %v149_v58 = vpop.permute.xlu0 %148  ;;  %v130_v60 = vsel %vm129_vm5, %v124_v52, %v126_v56 }
 0x11e   :  { %v134_v1 = vadd.f32 %v130_v60, %v111_v61 }
 0x121   :  { %338 = vperm.xlu1 %835, %v317_v51  }
 0x122   :  { %328 = vperm.xlu0 %843, %v317_v51  }
 0x123   :  { %844 = vset.pattern.permute.xlu2 %v867_v5 }
 0x124   :  { %348 = vperm.xlu2 %844, %v317_v51   ;;  %v128_v54 = vpop.permute.xlu1 %127 }
 0x125   :  { %v131_v62 = vsel %vm129_vm5, %v126_v56, %v128_v54 }
 0x126   :  { %v135_v6 = vadd.f32 %v131_v62, %v112_v63 }
 0x129   :  { %845 = vset.pattern.permute.xlu1 %v876_v21 }
 0x12a   :  { %848 = vset.pattern.permute.xlu0 %v869_v8  ;;  %v153_v8 = vsel %vm152_vm6, %v147_v53, %v149_v58 }
 0x12b   :  { %v157_v16 = vadd.f32 %v153_v8, %v134_v1 }
 0x12c   :  { %846 = vset.pattern.permute.xlu2 %v876_v21  ;;  %v151_v57 = vpop.permute.xlu1 %150 }
 0x12d   :  { %v154_v2 = vsel %vm152_vm6, %v149_v58, %v151_v57  ;;  %v159_v28 = vmul.f32 %v1073_v18, %v157_v16 }
 0x12e   :  { %v158_v15 = vadd.f32 %v154_v2, %v135_v6 }
 0x130   :  { %v160_v34 = vmul.f32 %v1076_v17, %v158_v15 }
 0x163   :  { %v289_v59 = vpop.permute.xlu2 %288 }
 0x16d   :  { %v305_v7 = vpop.permute.xlu2 %304 }
 0x175   :  { %v321_v25 = vpop.permute.xlu2 %320 }
 0x17e   :  { %v349_v53 = vpop.permute.xlu2 %348 }
 0x181   :  { %v293_v4 = vpop.permute.xlu1 %292 }
 0x182   :  { %v291_v14 = vpop.permute.xlu0 %290 }
 0x183   :  { %v295_v19 = vsel %vm294_vm10, %v289_v59, %v291_v14  ;;  %v296_v20 = vsel %vm294_vm10, %v291_v14, %v293_v4 }
 0x184   :  { %v299_v35 = vadd.f32 %v295_v19, %v159_v28  ;;  %v300_v22 = vadd.f32 %v296_v20, %v160_v34 }
 0x18b   :  { %v309_v31 = vpop.permute.xlu1 %308 }
 0x18c   :  { %v307_v26 = vpop.permute.xlu0 %306 }
 0x18d   :  { %v311_v27 = vsel %vm310_vm11, %v305_v7, %v307_v26  ;;  %v312_v29 = vsel %vm310_vm11, %v307_v26, %v309_v31 }
 0x18e   :  { %v315_v13 = vadd.f32 %v311_v27, %v299_v35  ;;  %v316_v30 = vadd.f32 %v312_v29, %v300_v22 }
 0x190   :  { %v351_v32 = vperm.slane %v315_v13, 3  ;;  %v352_v33 = vperm.slane %v316_v30, 3  ;;  %v373_v36 = vperm.slane %v315_v13, 7  ;;  %v374_v37 = vperm.slane %v316_v30, 7 }
 0x191   :  { %v341_v38 = vperm.slane %v315_v13, 2  ;;  %v342_v39 = vperm.slane %v316_v30, 2  ;;  %v323_v41 = vperm.slane %v315_v13, 0  ;;  %v324_v42 = vperm.slane %v316_v30, 0 }
 0x192   :  { %v367_v44 = vperm.slane %v315_v13, 6  ;;  %v368_v45 = vperm.slane %v316_v30, 6  ;;  %v331_v46 = vperm.slane %v315_v13, 1  ;;  %v332_v47 = vperm.slane %v316_v30, 1 }
 0x193   :  { %v339_v43 = vpop.permute.xlu1 %338  ;;  %v325_v49 = vmul.f32 %v323_v41, %v321_v25  ;;  %v326_v50 = vmul.f32 %v324_v42, %v321_v25  ;;  %v357_v51 = vperm.slane %v315_v13, 4  ;;  %v358_v52 = vperm.slane %v316_v30, 4 }
 0x194   :  { %v329_v23 = vpop.permute.xlu0 %328  ;;  %v361_v54 = vperm.slane %v315_v13, 5  ;;  %v362_v55 = vperm.slane %v316_v30, 5  ;;  %v343_v58 = vmul.f32 %v341_v38, %v339_v43  ;;  %v344_v59 = vmul.f32 %v342_v39, %v339_v43 }
 0x195   :  { %v333_v56 = vmul.f32 %v331_v46, %v329_v23  ;;  %v334_v57 = vmul.f32 %v332_v47, %v329_v23  ;;  %v359_v60 = vmul.f32 %v357_v51, %v321_v25  ;;  %v360_v61 = vmul.f32 %v358_v52, %v321_v25 }
 0x196   :  { %v363_v1 = vmul.f32 %v361_v54, %v329_v23  ;;  %v364_v8 = vmul.f32 %v362_v55, %v329_v23  ;;  %v353_v2 = vmul.f32 %v351_v32, %v349_v53  ;;  %v354_v4 = vmul.f32 %v352_v33, %v349_v53 }
 0x197   :  { %v335_v62 = vadd.f32 %v333_v56, %v325_v49  ;;  %v336_v63 = vadd.f32 %v334_v57, %v326_v50  ;;  %v369_v6 = vmul.f32 %v367_v44, %v339_v43  ;;  %v370_v7 = vmul.f32 %v368_v45, %v339_v43 }
 0x198   :  { %v365_v14 = vadd.f32 %v363_v1, %v359_v60  ;;  %v366_v16 = vadd.f32 %v364_v8, %v360_v61  ;;  %v375_v20 = vmul.f32 %v373_v36, %v349_v53  ;;  %v376_v28 = vmul.f32 %v374_v37, %v349_v53  ;;  %v379_v1 = vld [vmem:[%s1256_s3] sm:$0xf] }
 0x199   :  { %v345_v15 = vadd.f32 %v343_v58, %v335_v62  ;;  %v346_v19 = vadd.f32 %v344_v59, %v336_v63 }
 0x19a   :  { %v371_v34 = vadd.f32 %v369_v6, %v365_v14  ;;  %v372_v31 = vadd.f32 %v370_v7, %v366_v16  ;;  %v380_v6 = vld [vmem:[%s1257_s4] sm:$0xf] }
 0x19b   :  { %v1084_v35 = vadd.f32 %v353_v2, %v345_v15  ;;  %v1086_v22 = vadd.f32 %v354_v4, %v346_v19  ;;  %v1123_v16 = vld [vmem:[%s1258_s5] sm:$0xff] }
 0x19c   :  { %v1088_v25 = vadd.f32 %v375_v20, %v371_v34  ;;  %v1090_v26 = vadd.f32 %v376_v28, %v372_v31 }
 0x19d   :  { %v382_v27 = vsel %vm381_vm12, %v1084_v35, 0.0  ;;  %v383_v29 = vsel %vm381_vm12, %v1086_v22, 0.0  ;;  %v387_v30 = vmul.f32 %v1084_v35, %v1084_v35  ;;  %v388_v32 = vmul.f32 %v1086_v22, %v1086_v22 }
 0x19e   :  { %v384_v13 = vadd.f32 %v383_v29, %v382_v27  ;;  %v394_v33 = vsel %vm381_vm12, %v1088_v25, 0.0  ;;  %v395_v36 = vsel %vm381_vm12, %v1090_v26, 0.0  ;;  %v400_v42 = vmul.f32 %v1088_v25, %v1088_v25 }
 0x19f   :  { %v396_v37 = vadd.f32 %v395_v36, %v394_v33  ;;  %v389_v38 = vsel %vm381_vm12, %v387_v30, 0.0  ;;  %v390_v39 = vsel %vm381_vm12, %v388_v32, 0.0  ;;  %v401_v43 = vmul.f32 %v1090_v26, %v1090_v26 }
 0x1a0   :  { %385 = vadd.xlane.f32.xlu1 %v384_v13  ;;  %v391_v41 = vadd.f32 %v390_v39, %v389_v38  ;;  %v402_v44 = vsel %vm381_vm12, %v400_v42, 0.0 }
 0x1a1   :  { %397 = vadd.xlane.f32.xlu2 %v396_v37  ;;  %v403_v45 = vsel %vm381_vm12, %v401_v43, 0.0 }
 0x1a2   :  { %392 = vadd.xlane.f32.xlu0 %v391_v41  ;;  %v404_v46 = vadd.f32 %v403_v45, %v402_v44 }
 0x1a9   :  { %405 = vadd.xlane.f32.xlu2 %v404_v46 }
 0x213   :  { %v386_v23 = vpop.xlane.xlu1 %385 }
 0x214   :  { %v398_v47 = vpop.xlane.xlu2 %397 }
 0x215   :  { %v399_v49 = vadd.f32 %v398_v47, %v386_v23  ;;  %v393_v51 = vpop.xlane.xlu0 %392 }
 0x217   :  { %v408_v50 = vmul.f32 0.001953125, %v399_v49 }
 0x219   :  { %v410_v54 = vmul.f32 %v408_v50, %v408_v50 }
 0x21c   :  { %v406_v52 = vpop.xlane.xlu2 %405 }
 0x21d   :  { %v407_v53 = vadd.f32 %v406_v52, %v393_v51 }
 0x21f   :  { %v409_v55 = vmul.f32 0.001953125, %v407_v53 }
 0x221   :  { %v411_v56 = vsub.f32 %v409_v55, %v410_v54 }
 0x223   :  { %v412_v57 = vmax.f32 %v411_v56, 0.0 }
 0x225   :  { %v413_v58 = vadd.f32 1e-05, %v412_v57 }
 0x227   :  { %861 = vrsqrt.f32 %v413_v58  ;;  %vm420_vm14 = vweird.f32 %v413_v58 }
 0x22d   :  { %v862_v59 = vpop.eup %861 }
 0x22e   :  { %v415_v60 = vmul.f32 %v862_v59, %v413_v58  ;;  %vm421_vm13 = vweird.f32 %v862_v59 }
 0x22f   :  { %vm422_vm15 = vmor %vm420_vm14, %vm421_vm13 }
 0x230   :  { %v416_v61 = vmul.f32 %v862_v59, %v415_v60 }
 0x232   :  { %v417_v62 = vmul.f32 0.5, %v416_v61 }
 0x234   :  { %v418_v63 = vsub.f32 1.5, %v417_v62 }
 0x236   :  { %v419_v8 = vmul.f32 %v862_v59, %v418_v63 }
 0x238   :  { %v423_v2 = vsel %vm422_vm15, %v862_v59, %v419_v8 }
 0x239   :  { %v424_v4 = vmul.f32 %v423_v2, %v379_v1 }
 0x23b   :  { %429 = vperm.xlu1 %845, %v424_v4   ;;  %v425_v7 = vmul.f32 %v424_v4, %v408_v50 }
 0x23d   :  { %v426_v14 = vsub.f32 %v380_v6, %v425_v7 }
 0x23f   :  { %436 = vperm.xlu2 %846, %v426_v14  }
 0x243   :  { %847 = vset.pattern.permute.xlu1 %v865_v0 }
 0x244   :  { %546 = vperm.xlu1 %847, %v1123_v16  }
 0x247   :  { %849 = vset.pattern.permute.xlu2 %v866_v3 }
 0x24c   :  { %850 = vset.pattern.permute.xlu1 %v870_v9 }
 0x299   :  { %v437_v34 = vpop.permute.xlu2 %436 }
 0x2ad   :  { %v430_v15 = vpop.permute.xlu1 %429 }
 0x2ae   :  { %v432_v19 = vmul.f32 %v430_v15, %v1084_v35  ;;  %v433_v20 = vmul.f32 %v430_v15, %v1086_v22  ;;  %v458_v28 = vmul.f32 %v430_v15, %v1088_v25  ;;  %v459_v0 = vmul.f32 %v430_v15, %v1090_v26 }
 0x2b0   :  { %v440_v3 = vadd.f32 %v437_v34, %v433_v20  ;;  %v439_v31 = vadd.f32 %v437_v34, %v432_v19  ;;  %v461_v27 = vadd.f32 %v459_v0, %v437_v34  ;;  %v460_v32 = vadd.f32 %v458_v28, %v437_v34 }
 0x2b2   :  { %v442_v29 = vmax.f32 %v440_v3, 0.0  ;;  %v441_v13 = vmax.f32 %v439_v31, 0.0  ;;  %v463_v30 = vmax.f32 %v461_v27, 0.0  ;;  %v462_v35 = vmax.f32 %v460_v32, 0.0 }
 0x2b4   :  { %447 = vrot.lane.b32.xlu1 %v442_v29, %s868_s13  ;;  %445 = vrot.lane.b32.xlu0 %v441_v13, %s868_s13  ;;  %v467_v9 = vrot.slane %v463_v30, 4  ;;  %v466_v22 = vrot.slane %v462_v35, 4 }
 0x2b6   :  { %470 = vrot.lane.b32.xlu2 %v467_v9, %s868_s13  ;;  %v547_v25 = vpop.permute.xlu1 %546 }
 0x2bc   :  { %625 = vperm.xlu1 %850, %v1123_v16   ;;  %468 = vrot.lane.b32.xlu0 %v466_v22, %s868_s13 }
 0x2be   :  { %570 = vperm.xlu2 %849, %v1123_v16  }
 0x2c4   :  { %852 = vset.pattern.permute.xlu1 %v871_v10  ;;  %601 = vperm.xlu0 %848, %v1123_v16  }
 0x2c5   :  { %515 = vperm.xlu1 %852, %v1123_v16  }
 0x2c6   :  { %851 = vset.pattern.permute.xlu2 %v867_v5 }
 0x2c7   :  { %493 = vperm.xlu2 %851, %v1123_v16  }
 0x2cc   :  { %853 = vset.pattern.permute.xlu0 %v872_v11 }
 0x2cd   :  { %539 = vperm.xlu0 %853, %v1123_v16   ;;  %856 = vset.pattern.permute.xlu1 %v876_v21 }
 0x2cf   :  { %854 = vset.pattern.permute.xlu2 %v873_v12 }
 0x2d0   :  { %594 = vperm.xlu2 %854, %v1123_v16  }
 0x2d5   :  { %855 = vset.pattern.permute.xlu0 %v876_v21 }
 0x310   :  { %v471_v10 = vpop.permute.xlu2 %470 }
 0x311   :  { %480 = vst.msk [vmem:[#allocation2 + $0x10] sm:$0xf0] %vm479_vm0, %v471_v10 }
 0x318   :  { %v571_v46 = vpop.permute.xlu2 %570 }
 0x321   :  { %v494_v59 = vpop.permute.xlu2 %493 }
 0x326   :  { %v448_v26 = vpop.permute.xlu1 %447  ;;  %v446_v33 = vpop.permute.xlu0 %445 }
 0x327   :  { %457 = vst.msk [vmem:[#allocation2 + $0x10] sm:$0xf] %vm456_vm1, %v448_v26  ;;  %v449_v36 = vsel %vm93_vm2, %v446_v33, %v448_v26 }
 0x328   :  { %454 = vst.msk [vmem:[#allocation2] sm:$0xf] %vm453_vm3, %v446_v33 }
 0x329   :  { %455 = vst [vmem:[#allocation2 + $0x8] sm:$0xf] %v449_v36 }
 0x32a   :  { %v595_v8 = vpop.permute.xlu2 %594 }
 0x32e   :  { %v469_v37 = vpop.permute.xlu0 %468  ;;  %v1160_v45 = vld [vmem:[#allocation2 + $0x10] sm:$0xff]  ;;  %v626_v50 = vpop.permute.xlu1 %625 }
 0x32f   :  { %v472_v12 = vsel %vm93_vm2, %v469_v37, %v471_v10  ;;  %477 = vst.msk [vmem:[#allocation2] sm:$0xf0] %vm476_vm4, %v469_v37  ;;  %v551_v47 = vmul.f32 %v547_v25, %v1160_v45  ;;  %v575_v54 = vmul.f32 %v571_v46, %v1160_v45  ;;  %v630_v57 = vmul.f32 %v626_v50, %v1160_v45 }
 0x330   :  { %478 = vst [vmem:[#allocation2 + $0x8] sm:$0xf0] %v472_v12  ;;  %v498_v62 = vmul.f32 %v494_v59, %v1160_v45 }
 0x336   :  { %v1150_v38 = vld [vmem:[#allocation2] sm:$0xff]  ;;  %v602_v39 = vpop.permute.xlu0 %601 }
 0x337   :  { %v1152_v41 = vld [vmem:[#allocation2 + $0x8] sm:$0xff]  ;;  %v604_v42 = vmul.f32 %v602_v39, %v1150_v38  ;;  %v549_v43 = vmul.f32 %v547_v25, %v1150_v38  ;;  %v573_v23 = vmul.f32 %v571_v46, %v1150_v38  ;;  %v606_v51 = vmul.f32 %v602_v39, %v1160_v45  ;;  %v516_v56 = vpop.permute.xlu1 %515 }
 0x338   :  { %v550_v44 = vmul.f32 %v547_v25, %v1152_v41  ;;  %v605_v49 = vmul.f32 %v602_v39, %v1152_v41  ;;  %v628_v52 = vmul.f32 %v626_v50, %v1150_v38  ;;  %v574_v53 = vmul.f32 %v571_v46, %v1152_v41 }
 0x339   :  { %555 = vrot.lane.b32.xlu1 %v549_v43, %s875_s0  ;;  %610 = vrot.lane.b32.xlu0 %v604_v42, %s875_s0  ;;  %v629_v55 = vmul.f32 %v626_v50, %v1152_v41  ;;  %v519_v58 = vmul.f32 %v516_v56, %v1152_v41  ;;  %v496_v60 = vmul.f32 %v494_v59, %v1150_v38 }
 0x33a   :  { %557 = vrot.lane.b32.xlu2 %v550_v44, %s875_s0  ;;  %v518_v61 = vmul.f32 %v516_v56, %v1150_v38  ;;  %v497_v63 = vmul.f32 %v494_v59, %v1152_v41  ;;  %v520_v1 = vmul.f32 %v516_v56, %v1160_v45  ;;  %v597_v31 = vmul.f32 %v595_v8, %v1150_v38 }
 0x33b   :  { %v599_v42 = vmul.f32 %v595_v8, %v1160_v45  ;;  %v598_v44 = vmul.f32 %v595_v8, %v1152_v41 }
 0x33f   :  { %v540_v2 = vpop.permute.xlu0 %539 }
 0x340   :  { %v542_v15 = vmul.f32 %v540_v2, %v1150_v38  ;;  %v544_v22 = vmul.f32 %v540_v2, %v1160_v45  ;;  %v543_v25 = vmul.f32 %v540_v2, %v1152_v41 }
 0x341   :  { %559 = vrot.lane.b32.xlu1 %v551_v47, %s875_s0  ;;  %579 = vrot.lane.b32.xlu0 %v573_v23, %s877_s15 }
 0x342   :  { %612 = vrot.lane.b32.xlu2 %v605_v49, %s875_s0 }
 0x349   :  { %614 = vrot.lane.b32.xlu1 %v606_v51, %s875_s0  ;;  %634 = vrot.lane.b32.xlu0 %v628_v52, %s877_s15 }
 0x34a   :  { %581 = vrot.lane.b32.xlu2 %v574_v53, %s877_s15 }
 0x351   :  { %583 = vrot.lane.b32.xlu1 %v575_v54, %s877_s15  ;;  %487 = vperm.xlu0 %855, %v1123_v16  }
 0x352   :  { %636 = vrot.lane.b32.xlu2 %v629_v55, %s877_s15 }
 0x359   :  { %638 = vrot.lane.b32.xlu1 %v630_v57, %s877_s15  ;;  %526 = vrot.lane.b32.xlu0 %v519_v58, %s877_s15 }
 0x35a   :  { %857 = vset.pattern.permute.xlu0 %v872_v11  ;;  %502 = vrot.lane.b32.xlu2 %v496_v60, %s875_s0 }
 0x361   :  { %524 = vrot.lane.b32.xlu1 %v518_v61, %s877_s15 }
 0x362   :  { %506 = vrot.lane.b32.xlu2 %v498_v62, %s875_s0 }
 0x369   :  { %504 = vrot.lane.b32.xlu1 %v497_v63, %s875_s0 }
 0x36a   :  { %528 = vrot.lane.b32.xlu2 %v520_v1, %s877_s15 }
 0x394   :  { %v558_v11 = vpop.permute.xlu2 %557 }
 0x39c   :  { %v613_v4 = vpop.permute.xlu2 %612 }
 0x3a4   :  { %v582_v14 = vpop.permute.xlu2 %581 }
 0x3ab   :  { %v556_v6 = vpop.permute.xlu1 %555  ;;  %v611_v7 = vpop.permute.xlu0 %610 }
 0x3ac   :  { %v561_v16 = vsel %vm129_vm5, %v556_v6, %v558_v11  ;;  %v616_v3 = vsel %vm129_vm5, %v611_v7, %v613_v4  ;;  %v637_v27 = vpop.permute.xlu2 %636 }
 0x3ad   :  { %v566_v19 = vadd.f32 %v561_v16, %v542_v15  ;;  %v621_v29 = vadd.f32 %v616_v3, %v597_v31 }
 0x3b3   :  { %v560_v20 = vpop.permute.xlu1 %559  ;;  %v580_v28 = vpop.permute.xlu0 %579 }
 0x3b4   :  { %v585_v0 = vsel %vm152_vm6, %v580_v28, %v582_v14  ;;  %v562_v10 = vsel %vm129_vm5, %v558_v11, %v560_v20  ;;  %v568_v26 = vadd.f32 %v560_v20, %v544_v22  ;;  %v503_v45 = vpop.permute.xlu2 %502 }
 0x3b5   :  { %v590_v34 = vadd.f32 %v585_v0, %v566_v19  ;;  %v567_v33 = vadd.f32 %v562_v10, %v543_v25 }
 0x3b7   :  { %654 = vrot.lane.b32.xlu1 %v590_v34, %s879_s17 }
 0x3bb   :  { %v615_v13 = vpop.permute.xlu1 %614  ;;  %v635_v30 = vpop.permute.xlu0 %634 }
 0x3bc   :  { %v640_v32 = vsel %vm152_vm6, %v635_v30, %v637_v27  ;;  %v617_v43 = vsel %vm129_vm5, %v613_v4, %v615_v13  ;;  %v623_v46 = vadd.f32 %v615_v13, %v599_v42  ;;  %v507_v55 = vpop.permute.xlu2 %506 }
 0x3bd   :  { %v645_v9 = vadd.f32 %v640_v32, %v621_v29  ;;  %v622_v47 = vadd.f32 %v617_v43, %v598_v44 }
 0x3bf   :  { %v648_v35 = vmul.f32 %v1033_v24, %v645_v9  ;;  %v681_v24 = vld [vmem:[%s1259_s6] sm:$0xff] }
 0x3c1   :  { %669 = vrot.lane.b32.xlu1 %v648_v35, %s880_s18 }
 0x3c3   :  { %v584_v36 = vpop.permute.xlu1 %583  ;;  %v488_v56 = vpop.permute.xlu0 %487 }
 0x3c4   :  { %v586_v37 = vsel %vm152_vm6, %v582_v14, %v584_v36  ;;  %v592_v12 = vadd.f32 %v584_v36, %v568_v26  ;;  %v529_v57 = vpop.permute.xlu2 %528  ;;  %v491_v61 = vmul.f32 %v488_v56, %v1152_v41 }
 0x3c5   :  { %v591_v39 = vadd.f32 %v586_v37, %v567_v33 }
 0x3c6   :  { %658 = vrot.lane.b32.xlu2 %v592_v12, %s879_s17 }
 0x3c7   :  { %656 = vrot.lane.b32.xlu0 %v591_v39, %s879_s17 }
 0x3c9   :  { %684 = vperm.xlu1 %856, %v681_v24  }
 0x3cb   :  { %v639_v23 = vpop.permute.xlu1 %638 }
 0x3cc   :  { %v641_v49 = vsel %vm152_vm6, %v637_v27, %v639_v23  ;;  %v647_v50 = vadd.f32 %v639_v23, %v623_v46 }
 0x3cd   :  { %v646_v51 = vadd.f32 %v641_v49, %v622_v47 }
 0x3ce   :  { %v650_v52 = vmul.f32 %v1041_v40, %v647_v50 }
 0x3cf   :  { %v649_v53 = vmul.f32 %v646_v51, %v1049_v48  ;;  %v527_v48 = vpop.permute.xlu0 %526 }
 0x3d0   :  { %673 = vrot.lane.b32.xlu2 %v650_v52, %s880_s18  ;;  %v531_v8 = vsel %vm152_vm6, %v527_v48, %v529_v57 }
 0x3d1   :  { %671 = vrot.lane.b32.xlu0 %v649_v53, %s880_s18  ;;  %858 = vset.pattern.permute.xlu1 %v867_v5  ;;  %v490_v5 = vmul.f32 %v488_v56, %v1150_v38 }
 0x3d2   :  { %712 = vperm.xlu1 %858, %v681_v24  }
 0x3d3   :  { %v525_v54 = vpop.permute.xlu1 %524 }
 0x3d4   :  { %v530_v11 = vsel %vm152_vm6, %v525_v54, %v527_v48 }
 0x3d8   :  { %702 = vperm.xlu2 %854, %v681_v24  }
 0x3d9   :  { %692 = vperm.xlu0 %857, %v681_v24  }
 0x3da   :  { %859 = vset.pattern.permute.xlu1 %v876_v21 }
 0x3db   :  { %v505_v40 = vpop.permute.xlu1 %504 }
 0x3dc   :  { %v508_v59 = vsel %vm129_vm5, %v503_v45, %v505_v40  ;;  %v509_v60 = vsel %vm129_vm5, %v505_v40, %v507_v55 }
 0x3dd   :  { %v512_v62 = vadd.f32 %v508_v59, %v490_v5  ;;  %v513_v63 = vadd.f32 %v509_v60, %v491_v61 }
 0x3df   :  { %v534_v4 = vadd.f32 %v530_v11, %v512_v62  ;;  %v535_v6 = vadd.f32 %v531_v8, %v513_v63 }
 0x3e1   :  { %860 = vset.pattern.permute.xlu0 %v876_v21  ;;  %v536_v16 = vmul.f32 %v1073_v18, %v534_v4  ;;  %v537_v38 = vmul.f32 %v1076_v17, %v535_v6 }
 0x420   :  { %v659_v1 = vpop.permute.xlu2 %658 }
 0x429   :  { %v655_v58 = vpop.permute.xlu1 %654 }
 0x42a   :  { %v674_v41 = vpop.permute.xlu2 %673 }
 0x432   :  { %v703_v47 = vpop.permute.xlu2 %702 }
 0x433   :  { %v670_v2 = vpop.permute.xlu1 %669 }
 0x439   :  { %v657_v21 = vpop.permute.xlu0 %656 }
 0x43a   :  { %v660_v7 = vsel %vm294_vm10, %v655_v58, %v657_v21  ;;  %v661_v14 = vsel %vm294_vm10, %v657_v21, %v659_v1 }
 0x43b   :  { %v664_v15 = vadd.f32 %v660_v7, %v536_v16  ;;  %v665_v19 = vadd.f32 %v661_v14, %v537_v38  ;;  %v685_v28 = vpop.permute.xlu1 %684 }
 0x443   :  { %v672_v20 = vpop.permute.xlu0 %671 }
 0x444   :  { %v675_v0 = vsel %vm310_vm11, %v670_v2, %v672_v20  ;;  %v676_v34 = vsel %vm310_vm11, %v672_v20, %v674_v41  ;;  %v713_v23 = vpop.permute.xlu1 %712 }
 0x445   :  { %v679_v3 = vadd.f32 %v675_v0, %v664_v15  ;;  %v680_v31 = vadd.f32 %v676_v34, %v665_v19 }
 0x447   :  { %v687_v27 = vperm.slane %v679_v3, 0  ;;  %v688_v29 = vperm.slane %v680_v31, 0  ;;  %v715_v13 = vperm.slane %v679_v3, 3  ;;  %v716_v30 = vperm.slane %v680_v31, 3 }
 0x448   :  { %v737_v32 = vperm.slane %v679_v3, 7  ;;  %v738_v9 = vperm.slane %v680_v31, 7  ;;  %v695_v18 = vperm.slane %v679_v3, 1  ;;  %v696_v35 = vperm.slane %v680_v31, 1 }
 0x449   :  { %v721_v17 = vperm.slane %v679_v3, 4  ;;  %v722_v22 = vperm.slane %v680_v31, 4  ;;  %v725_v10 = vperm.slane %v679_v3, 5  ;;  %v726_v25 = vperm.slane %v680_v31, 5 }
 0x44a   :  { %v731_v33 = vperm.slane %v679_v3, 6  ;;  %v732_v36 = vperm.slane %v680_v31, 6  ;;  %v689_v37 = vmul.f32 %v687_v27, %v685_v28  ;;  %v690_v12 = vmul.f32 %v688_v29, %v685_v28 }
 0x44b   :  { %v693_v26 = vpop.permute.xlu0 %692  ;;  %v723_v42 = vmul.f32 %v721_v17, %v685_v28  ;;  %v724_v43 = vmul.f32 %v722_v22, %v685_v28  ;;  %v705_v51 = vperm.slane %v679_v3, 2  ;;  %v706_v52 = vperm.slane %v680_v31, 2  ;;  %v743_v17 = vld [vmem:[%s1260_s7] sm:$0xff] }
 0x44c   :  { %v697_v39 = vmul.f32 %v695_v18, %v693_v26  ;;  %v698_v24 = vmul.f32 %v696_v35, %v693_v26  ;;  %v727_v44 = vmul.f32 %v725_v10, %v693_v26  ;;  %v728_v46 = vmul.f32 %v726_v25, %v693_v26  ;;  %v744_v26 = vld [vmem:[%s1261_s8] sm:$0xff] }
 0x44d   :  { %v733_v54 = vmul.f32 %v731_v33, %v703_v47  ;;  %v734_v55 = vmul.f32 %v732_v36, %v703_v47  ;;  %v707_v56 = vmul.f32 %v705_v51, %v703_v47  ;;  %v708_v40 = vmul.f32 %v706_v52, %v703_v47 }
 0x44e   :  { %v699_v49 = vadd.f32 %v697_v39, %v689_v37  ;;  %v700_v50 = vadd.f32 %v698_v24, %v690_v12  ;;  %v729_v53 = vadd.f32 %v727_v44, %v723_v42  ;;  %v730_v45 = vadd.f32 %v728_v46, %v724_v43 }
 0x44f   :  { %v739_v57 = vmul.f32 %v737_v32, %v713_v23  ;;  %v740_v48 = vmul.f32 %v738_v9, %v713_v23  ;;  %v717_v60 = vmul.f32 %v715_v13, %v713_v23  ;;  %v718_v5 = vmul.f32 %v716_v30, %v713_v23 }
 0x450   :  { %v735_v58 = vadd.f32 %v733_v54, %v729_v53  ;;  %v736_v59 = vadd.f32 %v734_v55, %v730_v45  ;;  %v709_v61 = vadd.f32 %v707_v56, %v699_v49  ;;  %v710_v62 = vadd.f32 %v708_v40, %v700_v50 }
 0x452   :  { %v741_v63 = vadd.f32 %v739_v57, %v735_v58  ;;  %v742_v1 = vadd.f32 %v740_v48, %v736_v59  ;;  %v719_v21 = vadd.f32 %v717_v60, %v709_v61  ;;  %v720_v8 = vadd.f32 %v718_v5, %v710_v62 }
 0x454   :  { %v753_v11 = vadd.f32 %v742_v1, %v741_v63  ;;  %v745_v2 = vadd.f32 %v720_v8, %v719_v21  ;;  %v748_v4 = vmul.f32 %v719_v21, %v719_v21  ;;  %v749_v6 = vmul.f32 %v720_v8, %v720_v8 }
 0x455   :  { %v757_v14 = vmul.f32 %v741_v63, %v741_v63  ;;  %v758_v16 = vmul.f32 %v742_v1, %v742_v1 }
 0x456   :  { %754 = vadd.xlane.f32.xlu1 %v753_v11  ;;  %746 = vadd.xlane.f32.xlu2 %v745_v2  ;;  %v750_v7 = vadd.f32 %v749_v6, %v748_v4 }
 0x457   :  { %v759_v38 = vadd.f32 %v758_v16, %v757_v14 }
 0x458   :  { %751 = vadd.xlane.f32.xlu0 %v750_v7 }
 0x45e   :  { %760 = vadd.xlane.f32.xlu2 %v759_v38 }
 0x4c9   :  { %v755_v41 = vpop.xlane.xlu1 %754  ;;  %v747_v15 = vpop.xlane.xlu2 %746 }
 0x4ca   :  { %v756_v19 = vadd.f32 %v755_v41, %v747_v15 }
 0x4cb   :  { %v752_v28 = vpop.xlane.xlu0 %751 }
 0x4cc   :  { %v763_v20 = vmul.f32 0.001953125, %v756_v19 }
 0x4ce   :  { %v765_v3 = vmul.f32 %v763_v20, %v763_v20 }
 0x4d1   :  { %v761_v0 = vpop.xlane.xlu2 %760 }
 0x4d2   :  { %v762_v34 = vadd.f32 %v761_v0, %v752_v28 }
 0x4d4   :  { %v764_v31 = vmul.f32 0.001953125, %v762_v34 }
 0x4d6   :  { %v766_v27 = vsub.f32 %v764_v31, %v765_v3 }
 0x4d8   :  { %v767_v29 = vmax.f32 %v766_v27, 0.0 }
 0x4da   :  { %v768_v13 = vadd.f32 1e-05, %v767_v29 }
 0x4dc   :  { %863 = vrsqrt.f32 %v768_v13  ;;  %vm775_vm5 = vweird.f32 %v768_v13 }
 0x4e2   :  { %v864_v30 = vpop.eup %863 }
 0x4e3   :  { %v770_v32 = vmul.f32 %v864_v30, %v768_v13  ;;  %vm776_vm2 = vweird.f32 %v864_v30 }
 0x4e4   :  { %vm777_vm6 = vmor %vm775_vm5, %vm776_vm2 }
 0x4e5   :  { %v771_v9 = vmul.f32 %v864_v30, %v770_v32 }
 0x4e7   :  { %v772_v18 = vmul.f32 0.5, %v771_v9 }
 0x4e9   :  { %v773_v35 = vsub.f32 1.5, %v772_v18 }
 0x4eb   :  { %v774_v22 = vmul.f32 %v864_v30, %v773_v35 }
 0x4ed   :  { %v778_v10 = vsel %vm777_vm6, %v864_v30, %v774_v22 }
 0x4ee   :  { %v779_v25 = vmul.f32 %v778_v10, %v743_v17 }
 0x4f0   :  { %784 = vperm.xlu1 %859, %v779_v25   ;;  %v780_v33 = vmul.f32 %v779_v25, %v763_v20 }
 0x4f2   :  { %v781_v36 = vsub.f32 %v744_v26, %v780_v33 }
 0x4f4   :  { %791 = vperm.xlu0 %860, %v781_v36  }
 0x562   :  { %v785_v37 = vpop.permute.xlu1 %784 }
 0x563   :  { %v787_v12 = vmul.f32 %v785_v37, %v719_v21  ;;  %v788_v39 = vmul.f32 %v785_v37, %v720_v8  ;;  %v798_v24 = vmul.f32 %v785_v37, %v741_v63  ;;  %v799_v42 = vmul.f32 %v785_v37, %v742_v1 }
 0x566   :  { %v792_v43 = vpop.permute.xlu0 %791 }
 0x567   :  { %v794_v44 = vadd.f32 %v792_v43, %v787_v12  ;;  %v795_v46 = vadd.f32 %v792_v43, %v788_v39  ;;  %v800_v47 = vadd.f32 %v798_v24, %v792_v43  ;;  %v801_v23 = vadd.f32 %v799_v42, %v792_v43 }
 0x569   :  { %796 = vst [vmem:[%s1262_s9] sm:$0xff] %v794_v44 }
 0x56a   :  { %797 = vst [vmem:[%s1262_s9 + $0x8] sm:$0xff] %v795_v46 }
 0x56b   :  { %802 = vst [vmem:[%s1262_s9 + $0x10] sm:$0xff] %v800_v47 }
 0x56c   :  { %803 = vst [vmem:[%s1262_s9 + $0x18] sm:$0xff] %v801_v23 }

</bundles_post_ra>
